<compile_context>
chip_gen: v7x
topology: tpu7x:2x2x1
jax: 0.10.0
libtpu: 0.0.40
codegen_flags: <defaults>
</compile_context>

<pallas_src>
import functools

import jax
import jax.numpy as jnp
from jax.experimental import pallas as pl
from jax.experimental.pallas import tpu as pltpu

IMG = 32
PATCH = 8
N_TOKENS = (IMG // PATCH) * (IMG // PATCH)      # 16 tokens per image
CHANNELS = 3
PATCH_DIM = CHANNELS * PATCH * PATCH            # 192
PATCH_DIM_PAD = 256                             # zero-padded contraction depth for the MXU
NUM_CLASSES = 10
EPS = 1e-6


def _rmsnorm_f32(x):
    return x * jax.lax.rsqrt(jnp.mean(x * x, axis=-1, keepdims=True) + EPS)


# --------------------------- the single fused kernel ---------------------------

def _vit_fused_kernel(patches_ref, wpatch_ref, pos_ref, bias_ref,
                      wqkv_ref, wo_ref, w1_ref, w2_ref, whead_ref, lab_ref,
                      loss_ref, corr_ref, x_scr,
                      *, n_heads, tokens, n_img):
    d = pl.program_id(1)
    last = pl.num_programs(1) - 1
    R, D = x_scr.shape
    hd = D // n_heads
    scale = 1.0 / float(hd) ** 0.5

    # ---- patch embedding + positional embedding (first depth step only) ----
    @pl.when(d == 0)
    def _():
        emb = jnp.dot(patches_ref[...], wpatch_ref[...],
                      preferred_element_type=jnp.float32)              # (R, D) f32
        emb = emb.reshape(n_img, tokens, D) + pos_ref[...][None]       # sublane split only
        x_scr[...] = emb.reshape(R, D)

    x = x_scr[...]                                                     # (R, D) f32, resident

    # ---- attention sub-layer (layer d) ----
    h = _rmsnorm_f32(x)
    qkv = jnp.dot(h.astype(jnp.bfloat16), wqkv_ref[...],
                  preferred_element_type=jnp.float32)                  # (R, 3D)
    bias = bias_ref[...]                                               # (R, R) 0 / -1e30
    wo = wo_ref[...]                                                   # (D, D) bf16
    attn = jnp.zeros((R, D), jnp.float32)
    for hi in range(n_heads):
        lo = hi * hd
        qh = qkv[:, 0 * D + lo:0 * D + lo + hd].astype(jnp.bfloat16)
        kh = qkv[:, 1 * D + lo:1 * D + lo + hd].astype(jnp.bfloat16)
        vh = qkv[:, 2 * D + lo:2 * D + lo + hd].astype(jnp.bfloat16)
        s = jax.lax.dot_general(qh, kh, (((1,), (1,)), ((), ())),
                                preferred_element_type=jnp.float32) * scale + bias
        m = jnp.max(s, axis=-1, keepdims=True)
        p = jnp.exp(s - m)
        p = p * pl.reciprocal(jnp.sum(p, axis=-1, keepdims=True), approx=True)
        oh = jnp.dot(p.astype(jnp.bfloat16), vh, preferred_element_type=jnp.float32)
        # fold the head back through its row-block of W_o (avoids a lane concat)
        attn = attn + jnp.dot(oh.astype(jnp.bfloat16), wo[lo:lo + hd, :],
                              preferred_element_type=jnp.float32)
    x = x + attn                                                       # residual (f32)

    # ---- mlp sub-layer (relu^2) ----
    h = _rmsnorm_f32(x)
    m1 = jnp.dot(h.astype(jnp.bfloat16), w1_ref[...], preferred_element_type=jnp.float32)
    m1 = jnp.maximum(m1, 0.0)
    m1 = m1 * m1
    m2 = jnp.dot(m1.astype(jnp.bfloat16), w2_ref[...], preferred_element_type=jnp.float32)
    x = x + m2
    x_scr[...] = x                                                     # stays in VMEM

    # ---- final norm + mean-pool + class head + per-image CE / correctness ----
    @pl.when(d == last)
    def _():
        xn = _rmsnorm_f32(x)
        pooled = jnp.sum(xn.reshape(n_img, tokens, D), axis=1) * (1.0 / tokens)   # (nb, D) f32
        logits = jnp.dot(pooled, whead_ref[...],
                         preferred_element_type=jnp.float32)                      # (nb, C) f32
        lab = lab_ref[...]                                                        # (nb, 1) int32
        ncls = logits.shape[-1]
        cls = jax.lax.broadcasted_iota(jnp.int32, logits.shape, 1)
        onehot = (cls == lab).astype(jnp.float32)
        mx = jnp.max(logits, axis=-1, keepdims=True)
        lse = jnp.log(jnp.sum(jnp.exp(logits - mx), axis=-1, keepdims=True)) + mx
        picked = jnp.sum(logits * onehot, axis=-1, keepdims=True)
        loss_ref[...] = (lse - picked)[None]                                      # (1, nb, 1)
        # argmax with first-max tie-break (matches torch.argmax)
        is_max = logits == mx
        first = jnp.min(jnp.where(is_max, cls, jnp.int32(ncls)), axis=-1, keepdims=True)
        corr_ref[...] = (first == lab).astype(jnp.float32)[None]


# ------------------------------ model definition ------------------------------

def init_params(key, dim, depth, n_heads):
    assert dim % n_heads == 0 and dim % 128 == 0
    ks = jax.random.split(key, 6)

    def w(k, fan_in, shape):
        return (jax.random.normal(k, shape, jnp.float32) * fan_in ** -0.5).astype(jnp.bfloat16)

    w_patch = w(ks[0], PATCH_DIM, (PATCH_DIM, dim))
    w_patch = jnp.pad(w_patch, ((0, PATCH_DIM_PAD - PATCH_DIM), (0, 0)))  # zero rows: padded K
    return {
        # FusedLinear-style bias-free weights stored (in, out), bf16 for the MXU,
        # stacked along a leading depth axis so one pallas_call runs the whole stack.
        "w_patch": w_patch,                                                  # (256, dim) bf16
        "pos_emb": jax.random.normal(ks[1], (N_TOKENS, dim), jnp.float32) * 0.02,
        "w_qkv": w(ks[2], dim, (depth, dim, 3 * dim)),
        "w_o": w(ks[3], dim, (depth, dim, dim)),
        "w_mlp1": w(ks[4], dim, (depth, dim, 4 * dim)),
        "w_mlp2": w(ks[5], 4 * dim, (depth, 4 * dim, dim)),
        # class_head.weight.data.zero_() in the module; kept f32 (head matmul runs f32)
        "w_head": jnp.zeros((dim, NUM_CLASSES), jnp.float32),
    }


def vit_classifier_forward(params, images, labels, *, n_heads):
    # mirrors ViTClassifier.forward: returns (loss, acc)
    N, C, H, W = images.shape
    assert jnp.issubdtype(images.dtype, jnp.floating)
    assert C == CHANNELS and H == IMG and W == IMG
    assert labels.shape == (N,)
    T = N_TOKENS
    dim = params["pos_emb"].shape[-1]
    depth = params["w_qkv"].shape[0]

    # image-group sizing: sublane/lane-dense rows, but keep >= 2 groups whenever the
    # batch allows so the "parallel" grid axis can shard across both v7x TensorCores.
    nb = max(1, min(N, 128 // T))
    while N % nb:
        nb -= 1
    if N // nb < 2:
        for cand in range(nb // 2, 0, -1):
            if N % cand == 0:
                nb = cand
                break
    rows = nb * T
    num_groups = N // nb

    # patch extraction: NCHW -> (N*T, 192) bf16, zero-padded to 256 (pure layout glue)
    p = images.reshape(N, C, H // PATCH, PATCH, W // PATCH, PATCH)
    p = jnp.transpose(p, (0, 2, 4, 1, 3, 5)).reshape(N * T, PATCH_DIM)
    p = jnp.pad(p.astype(jnp.bfloat16), ((0, 0), (0, PATCH_DIM_PAD - PATCH_DIM)))

    # block-diagonal additive attention bias: tokens attend only within their own image
    img_id = jnp.arange(rows, dtype=jnp.int32) // T
    bias = jnp.where(img_id[:, None] == img_id[None, :], 0.0, -1e30).astype(jnp.float32)

    labels3d = labels.astype(jnp.int32).reshape(num_groups, nb, 1)

    flops = (2 * N * T * PATCH_DIM_PAD * dim
             + depth * (24 * N * T * dim * dim + 4 * N * T * rows * dim)
             + 2 * N * dim * NUM_CLASSES)
    cost = pl.CostEstimate(
        flops=int(flops),
        transcendentals=int(depth * n_heads * N * T * rows),
        bytes_accessed=int(N * T * PATCH_DIM_PAD * 2
                           + num_groups * depth * 12 * dim * dim * 2
                           + rows * rows * 4 + PATCH_DIM_PAD * dim * 2 + 16 * N),
    )

    loss_per, corr_per = pl.pallas_call(
        functools.partial(_vit_fused_kernel, n_heads=n_heads, tokens=T, n_img=nb),
        out_shape=(jax.ShapeDtypeStruct((num_groups, nb, 1), jnp.float32),
                   jax.ShapeDtypeStruct((num_groups, nb, 1), jnp.float32)),
        grid=(num_groups, depth),
        in_specs=[
            pl.BlockSpec((rows, PATCH_DIM_PAD), lambda g, d: (g, 0)),      # patches (per group)
            pl.BlockSpec((PATCH_DIM_PAD, dim), lambda g, d: (0, 0)),       # w_patch (constant)
            pl.BlockSpec((T, dim), lambda g, d: (0, 0)),                   # pos_emb (constant)
            pl.BlockSpec((rows, rows), lambda g, d: (0, 0)),               # attn bias (constant)
            pl.BlockSpec((None, dim, 3 * dim), lambda g, d: (d, 0, 0)),    # w_qkv[d]
            pl.BlockSpec((None, dim, dim), lambda g, d: (d, 0, 0)),        # w_o[d]
            pl.BlockSpec((None, dim, 4 * dim), lambda g, d: (d, 0, 0)),    # w_mlp1[d]
            pl.BlockSpec((None, 4 * dim, dim), lambda g, d: (d, 0, 0)),    # w_mlp2[d]
            pl.BlockSpec((dim, NUM_CLASSES), lambda g, d: (0, 0)),         # w_head (constant)
            pl.BlockSpec((None, nb, 1), lambda g, d: (g, 0, 0)),           # labels (per group)
        ],
        out_specs=(pl.BlockSpec((1, nb, 1), lambda g, d: (g, 0, 0)),       # per-image loss
                   pl.BlockSpec((1, nb, 1), lambda g, d: (g, 0, 0))),      # per-image correct
        scratch_shapes=[pltpu.VMEM((rows, dim), jnp.float32)],             # resident activations
        compiler_params=pltpu.CompilerParams(
            dimension_semantics=("parallel", "arbitrary"),
            vmem_limit_bytes=32 * 1024 * 1024,
        ),
        cost_estimate=cost,
    )(p, params["w_patch"], params["pos_emb"], bias,
      params["w_qkv"], params["w_o"], params["w_mlp1"], params["w_mlp2"],
      params["w_head"], labels3d)

    # two trivial O(N) reductions (mean CE loss, accuracy) — everything else ran in-kernel
    return jnp.mean(loss_per), jnp.mean(corr_per)


# ------------------------------------ main ------------------------------------

if __name__ == "__main__":
    dim, depth, n_heads = 128, 2, 2     # lane-dense dim (multiple of 128)
    batch = 8                           # -> nb=4 images/group, rows=64, grid=(2, depth)

    key = jax.random.PRNGKey(0)
    k_img, k_lab, k_par = jax.random.split(key, 3)
    images = jax.random.normal(k_img, (batch, CHANNELS, IMG, IMG), jnp.float32)
    labels = jax.random.randint(k_lab, (batch,), 0, NUM_CLASSES, jnp.int32)
    params = init_params(k_par, dim, depth, n_heads)

    fwd = jax.jit(functools.partial(vit_classifier_forward, n_heads=n_heads))
    loss, acc = fwd(params, images, labels)
    jax.block_until_ready((loss, acc))

    # sanity: zero-init class head -> uniform logits -> loss == log(10)
    assert abs(float(loss) - float(jnp.log(10.0))) < 1e-4, float(loss)
    assert 0.0 <= float(acc) <= 1.0
    print("KERNEL_OK")
</pallas_src>

<mosaic_0001>
module attributes {stable_mosaic.version = 11 : i64} {
  func.func @_vit_fused_kernel(%arg0: i32, %arg1: i32, %arg2: memref<64x256xbf16, #tpu.memory_space<vmem>>, %arg3: memref<256x128xbf16, #tpu.memory_space<vmem>>, %arg4: memref<16x128xf32, #tpu.memory_space<vmem>>, %arg5: memref<64x64xf32, #tpu.memory_space<vmem>>, %arg6: memref<1x128x384xbf16, #tpu.memory_space<vmem>>, %arg7: memref<1x128x128xbf16, #tpu.memory_space<vmem>>, %arg8: memref<1x128x512xbf16, #tpu.memory_space<vmem>>, %arg9: memref<1x512x128xbf16, #tpu.memory_space<vmem>>, %arg10: memref<128x10xf32, #tpu.memory_space<vmem>>, %arg11: memref<1x4x1xi32, #tpu.memory_space<vmem>>, %arg12: memref<1x4x1xf32, #tpu.memory_space<vmem>>, %arg13: memref<1x4x1xf32, #tpu.memory_space<vmem>>, %arg14: memref<64x128xf32, #tpu.memory_space<vmem>>) attributes {dimension_semantics = [#tpu.dimension_semantics<parallel>, #tpu.dimension_semantics<arbitrary>], iteration_bounds = array<i64: 2, 2>, scalar_prefetch = 0 : i64, scratch_operands = 1 : i64, tpu.core_type = #tpu.core_type<tc>, window_params = [{transform_indices = @transform_0, window_bounds = array<i64: 64, 256>}, {pipeline_mode = #tpu.pipeline_mode<synchronous>, transform_indices = @transform_1, window_bounds = array<i64: 256, 128>}, {pipeline_mode = #tpu.pipeline_mode<synchronous>, transform_indices = @transform_2, window_bounds = array<i64: 16, 128>}, {pipeline_mode = #tpu.pipeline_mode<synchronous>, transform_indices = @transform_3, window_bounds = array<i64: 64, 64>}, {transform_indices = @transform_4, window_bounds = array<i64: 1, 128, 384>}, {transform_indices = @transform_5, window_bounds = array<i64: 1, 128, 128>}, {transform_indices = @transform_6, window_bounds = array<i64: 1, 128, 512>}, {transform_indices = @transform_7, window_bounds = array<i64: 1, 512, 128>}, {pipeline_mode = #tpu.pipeline_mode<synchronous>, transform_indices = @transform_8, window_bounds = array<i64: 128, 10>}, {transform_indices = @transform_9, window_bounds = array<i64: 1, 4, 1>}, {transform_indices = @transform_10, window_bounds = array<i64: 1, 4, 1>}, {transform_indices = @transform_11, window_bounds = array<i64: 1, 4, 1>}]} {
    %c0_i32 = arith.constant 0 : i32
    %0 = arith.cmpi eq, %arg1, %c0_i32 : i32
    %1 = arith.extui %0 : i1 to i32
    %c0_i32_0 = arith.constant 0 : i32
    %2 = arith.cmpi ne, %1, %c0_i32_0 : i32
    scf.if %2 {
      %c0_41 = arith.constant 0 : index
      %c0_42 = arith.constant 0 : index
      %101 = vector.load %arg2[%c0_41, %c0_42] : memref<64x256xbf16, #tpu.memory_space<vmem>>, vector<64x256xbf16>
      %c0_43 = arith.constant 0 : index
      %c0_44 = arith.constant 0 : index
      %102 = vector.load %arg3[%c0_43, %c0_44] : memref<256x128xbf16, #tpu.memory_space<vmem>>, vector<256x128xbf16>
      %cst_45 = arith.constant dense<0.000000e+00> : vector<64x128xf32>
      %103 = tpu.matmul %101, %102, %cst_45 {dimension_numbers = #tpu.dot_dimension_numbers<[1], [0], [0], [1], [0, 0, 1, 1], [], []>} : vector<64x256xbf16>, vector<256x128xbf16>, vector<64x128xf32> -> vector<64x128xf32>
      %104 = vector.shape_cast %103 : vector<64x128xf32> to vector<4x16x128xf32>
      %c0_46 = arith.constant 0 : index
      %c0_47 = arith.constant 0 : index
      %105 = vector.load %arg4[%c0_46, %c0_47] : memref<16x128xf32, #tpu.memory_space<vmem>>, vector<16x128xf32>
      %106 = vector.shape_cast %105 : vector<16x128xf32> to vector<1x16x128xf32>
      %107 = vector.broadcast %106 : vector<1x16x128xf32> to vector<4x16x128xf32>
      %108 = arith.addf %104, %107 : vector<4x16x128xf32>
      %109 = vector.shape_cast %108 : vector<4x16x128xf32> to vector<64x128xf32>
      %c0_48 = arith.constant 0 : index
      %c0_49 = arith.constant 0 : index
      %110 = vector.load %arg14[%c0_48, %c0_49] : memref<64x128xf32, #tpu.memory_space<vmem>>, vector<64x128xf32>
      tpu.vector_store %arg14[%c0_48, %c0_49], %109 {strides = array<i32>} : memref<64x128xf32, #tpu.memory_space<vmem>>, vector<64x128xf32>,
    } else {
    }
    %c0 = arith.constant 0 : index
    %c0_1 = arith.constant 0 : index
    %3 = vector.load %arg14[%c0, %c0_1] : memref<64x128xf32, #tpu.memory_space<vmem>>, vector<64x128xf32>
    %4 = arith.mulf %3, %3 : vector<64x128xf32>
    %cst = arith.constant dense<0.000000e+00> : vector<64xf32>
    %5 = vector.multi_reduction <add>, %4, %cst [1] : vector<64x128xf32> to vector<64xf32>
    %6 = vector.shape_cast %5 : vector<64xf32> to vector<64x1xf32>
    %cst_2 = arith.constant 1.280000e+02 : f32
    %7 = vector.broadcast %cst_2 : f32 to vector<64x1xf32>
    %8 = arith.divf %6, %7 : vector<64x1xf32>
    %cst_3 = arith.constant 9.99999997E-7 : f32
    %9 = vector.broadcast %cst_3 : f32 to vector<64x1xf32>
    %10 = arith.addf %8, %9 : vector<64x1xf32>
    %11 = math.rsqrt %10 : vector<64x1xf32>
    %12 = vector.broadcast %11 : vector<64x1xf32> to vector<64x128xf32>
    %13 = arith.mulf %3, %12 : vector<64x128xf32>
    %14 = arith.truncf %13 : vector<64x128xf32> to vector<64x128xbf16>
    %c0_4 = arith.constant 0 : index
    %c0_5 = arith.constant 0 : index
    %c0_6 = arith.constant 0 : index
    %15 = vector.load %arg6[%c0_4, %c0_5, %c0_6] : memref<1x128x384xbf16, #tpu.memory_space<vmem>>, vector<1x128x384xbf16>
    %16 = vector.shape_cast %15 : vector<1x128x384xbf16> to vector<128x384xbf16>
    %cst_7 = arith.constant dense<0.000000e+00> : vector<64x384xf32>
    %17 = tpu.matmul %14, %16, %cst_7 {dimension_numbers = #tpu.dot_dimension_numbers<[1], [0], [0], [1], [0, 0, 1, 1], [], []>} : vector<64x128xbf16>, vector<128x384xbf16>, vector<64x384xf32> -> vector<64x384xf32>
    %c0_8 = arith.constant 0 : index
    %c0_9 = arith.constant 0 : index
    %18 = vector.load %arg5[%c0_8, %c0_9] : memref<64x64xf32, #tpu.memory_space<vmem>>, vector<64x64xf32>
    %c0_10 = arith.constant 0 : index
    %c0_11 = arith.constant 0 : index
    %c0_12 = arith.constant 0 : index
    %19 = vector.load %arg7[%c0_10, %c0_11, %c0_12] : memref<1x128x128xbf16, #tpu.memory_space<vmem>>, vector<1x128x128xbf16>
    %20 = vector.shape_cast %19 : vector<1x128x128xbf16> to vector<128x128xbf16>
    %cst_13 = arith.constant 0.000000e+00 : f32
    %21 = vector.broadcast %cst_13 : f32 to vector<64x128xf32>
    %22 = vector.extract_strided_slice %17 {offsets = [0, 0], sizes = [64, 64], strides = [1, 1]} : vector<64x384xf32> to vector<64x64xf32>
    %23 = arith.truncf %22 : vector<64x64xf32> to vector<64x64xbf16>
    %24 = vector.extract_strided_slice %17 {offsets = [0, 128], sizes = [64, 64], strides = [1, 1]} : vector<64x384xf32> to vector<64x64xf32>
    %25 = arith.truncf %24 : vector<64x64xf32> to vector<64x64xbf16>
    %26 = vector.extract_strided_slice %17 {offsets = [0, 256], sizes = [64, 64], strides = [1, 1]} : vector<64x384xf32> to vector<64x64xf32>
    %27 = arith.truncf %26 : vector<64x64xf32> to vector<64x64xbf16>
    %cst_14 = arith.constant dense<0.000000e+00> : vector<64x64xf32>
    %28 = tpu.matmul %23, %25, %cst_14 {dimension_numbers = #tpu.dot_dimension_numbers<[1], [1], [0], [0], [0, 0, 1, 0], [], []>} : vector<64x64xbf16>, vector<64x64xbf16>, vector<64x64xf32> -> vector<64x64xf32>
    %cst_15 = arith.constant 1.250000e-01 : f32
    %29 = vector.broadcast %cst_15 : f32 to vector<64x64xf32>
    %30 = arith.mulf %28, %29 : vector<64x64xf32>
    %31 = arith.addf %30, %18 : vector<64x64xf32>
    %cst_16 = arith.constant dense<0xFF800000> : vector<64xf32>
    %32 = vector.multi_reduction <maximumf>, %31, %cst_16 [1] : vector<64x64xf32> to vector<64xf32>
    %33 = vector.shape_cast %32 : vector<64xf32> to vector<64x1xf32>
    %34 = vector.broadcast %33 : vector<64x1xf32> to vector<64x64xf32>
    %35 = arith.subf %31, %34 : vector<64x64xf32>
    %36 = math.exp %35 : vector<64x64xf32>
    %cst_17 = arith.constant dense<0.000000e+00> : vector<64xf32>
    %37 = vector.multi_reduction <add>, %36, %cst_17 [1] : vector<64x64xf32> to vector<64xf32>
    %38 = vector.shape_cast %37 : vector<64xf32> to vector<64x1xf32>
    %39 = tpu.reciprocal %38 {approx = true} : vector<64x1xf32> -> vector<64x1xf32>
    %40 = vector.broadcast %39 : vector<64x1xf32> to vector<64x64xf32>
    %41 = arith.mulf %36, %40 : vector<64x64xf32>
    %42 = arith.truncf %41 : vector<64x64xf32> to vector<64x64xbf16>
    %cst_18 = arith.constant dense<0.000000e+00> : vector<64x64xf32>
    %43 = tpu.matmul %42, %27, %cst_18 {dimension_numbers = #tpu.dot_dimension_numbers<[1], [0], [0], [1], [0, 0, 1, 1], [], []>} : vector<64x64xbf16>, vector<64x64xbf16>, vector<64x64xf32> -> vector<64x64xf32>
    %44 = arith.truncf %43 : vector<64x64xf32> to vector<64x64xbf16>
    %45 = vector.extract_strided_slice %20 {offsets = [0, 0], sizes = [64, 128], strides = [1, 1]} : vector<128x128xbf16> to vector<64x128xbf16>
    %cst_19 = arith.constant dense<0.000000e+00> : vector<64x128xf32>
    %46 = tpu.matmul %44, %45, %cst_19 {dimension_numbers = #tpu.dot_dimension_numbers<[1], [0], [0], [1], [0, 0, 1, 1], [], []>} : vector<64x64xbf16>, vector<64x128xbf16>, vector<64x128xf32> -> vector<64x128xf32>
    %47 = arith.addf %21, %46 : vector<64x128xf32>
    %48 = vector.extract_strided_slice %17 {offsets = [0, 64], sizes = [64, 64], strides = [1, 1]} : vector<64x384xf32> to vector<64x64xf32>
    %49 = arith.truncf %48 : vector<64x64xf32> to vector<64x64xbf16>
    %50 = vector.extract_strided_slice %17 {offsets = [0, 192], sizes = [64, 64], strides = [1, 1]} : vector<64x384xf32> to vector<64x64xf32>
    %51 = arith.truncf %50 : vector<64x64xf32> to vector<64x64xbf16>
    %52 = vector.extract_strided_slice %17 {offsets = [0, 320], sizes = [64, 64], strides = [1, 1]} : vector<64x384xf32> to vector<64x64xf32>
    %53 = arith.truncf %52 : vector<64x64xf32> to vector<64x64xbf16>
    %cst_20 = arith.constant dense<0.000000e+00> : vector<64x64xf32>
    %54 = tpu.matmul %49, %51, %cst_20 {dimension_numbers = #tpu.dot_dimension_numbers<[1], [1], [0], [0], [0, 0, 1, 0], [], []>} : vector<64x64xbf16>, vector<64x64xbf16>, vector<64x64xf32> -> vector<64x64xf32>
    %cst_21 = arith.constant 1.250000e-01 : f32
    %55 = vector.broadcast %cst_21 : f32 to vector<64x64xf32>
    %56 = arith.mulf %54, %55 : vector<64x64xf32>
    %57 = arith.addf %56, %18 : vector<64x64xf32>
    %cst_22 = arith.constant dense<0xFF800000> : vector<64xf32>
    %58 = vector.multi_reduction <maximumf>, %57, %cst_22 [1] : vector<64x64xf32> to vector<64xf32>
    %59 = vector.shape_cast %58 : vector<64xf32> to vector<64x1xf32>
    %60 = vector.broadcast %59 : vector<64x1xf32> to vector<64x64xf32>
    %61 = arith.subf %57, %60 : vector<64x64xf32>
    %62 = math.exp %61 : vector<64x64xf32>
    %cst_23 = arith.constant dense<0.000000e+00> : vector<64xf32>
    %63 = vector.multi_reduction <add>, %62, %cst_23 [1] : vector<64x64xf32> to vector<64xf32>
    %64 = vector.shape_cast %63 : vector<64xf32> to vector<64x1xf32>
    %65 = tpu.reciprocal %64 {approx = true} : vector<64x1xf32> -> vector<64x1xf32>
    %66 = vector.broadcast %65 : vector<64x1xf32> to vector<64x64xf32>
    %67 = arith.mulf %62, %66 : vector<64x64xf32>
    %68 = arith.truncf %67 : vector<64x64xf32> to vector<64x64xbf16>
    %cst_24 = arith.constant dense<0.000000e+00> : vector<64x64xf32>
    %69 = tpu.matmul %68, %53, %cst_24 {dimension_numbers = #tpu.dot_dimension_numbers<[1], [0], [0], [1], [0, 0, 1, 1], [], []>} : vector<64x64xbf16>, vector<64x64xbf16>, vector<64x64xf32> -> vector<64x64xf32>
    %70 = arith.truncf %69 : vector<64x64xf32> to vector<64x64xbf16>
    %71 = vector.extract_strided_slice %20 {offsets = [64, 0], sizes = [64, 128], strides = [1, 1]} : vector<128x128xbf16> to vector<64x128xbf16>
    %cst_25 = arith.constant dense<0.000000e+00> : vector<64x128xf32>
    %72 = tpu.matmul %70, %71, %cst_25 {dimension_numbers = #tpu.dot_dimension_numbers<[1], [0], [0], [1], [0, 0, 1, 1], [], []>} : vector<64x64xbf16>, vector<64x128xbf16>, vector<64x128xf32> -> vector<64x128xf32>
    %73 = arith.addf %47, %72 : vector<64x128xf32>
    %74 = arith.addf %3, %73 : vector<64x128xf32>
    %75 = arith.mulf %74, %74 : vector<64x128xf32>
    %cst_26 = arith.constant dense<0.000000e+00> : vector<64xf32>
    %76 = vector.multi_reduction <add>, %75, %cst_26 [1] : vector<64x128xf32> to vector<64xf32>
    %77 = vector.shape_cast %76 : vector<64xf32> to vector<64x1xf32>
    %cst_27 = arith.constant 1.280000e+02 : f32
    %78 = vector.broadcast %cst_27 : f32 to vector<64x1xf32>
    %79 = arith.divf %77, %78 : vector<64x1xf32>
    %cst_28 = arith.constant 9.99999997E-7 : f32
    %80 = vector.broadcast %cst_28 : f32 to vector<64x1xf32>
    %81 = arith.addf %79, %80 : vector<64x1xf32>
    %82 = math.rsqrt %81 : vector<64x1xf32>
    %83 = vector.broadcast %82 : vector<64x1xf32> to vector<64x128xf32>
    %84 = arith.mulf %74, %83 : vector<64x128xf32>
    %85 = arith.truncf %84 : vector<64x128xf32> to vector<64x128xbf16>
    %c0_29 = arith.constant 0 : index
    %c0_30 = arith.constant 0 : index
    %c0_31 = arith.constant 0 : index
    %86 = vector.load %arg8[%c0_29, %c0_30, %c0_31] : memref<1x128x512xbf16, #tpu.memory_space<vmem>>, vector<1x128x512xbf16>
    %87 = vector.shape_cast %86 : vector<1x128x512xbf16> to vector<128x512xbf16>
    %cst_32 = arith.constant dense<0.000000e+00> : vector<64x512xf32>
    %88 = tpu.matmul %85, %87, %cst_32 {dimension_numbers = #tpu.dot_dimension_numbers<[1], [0], [0], [1], [0, 0, 1, 1], [], []>} : vector<64x128xbf16>, vector<128x512xbf16>, vector<64x512xf32> -> vector<64x512xf32>
    %cst_33 = arith.constant 0.000000e+00 : f32
    %89 = vector.broadcast %cst_33 : f32 to vector<64x512xf32>
    %90 = arith.maximumf %88, %89 : vector<64x512xf32>
    %91 = arith.mulf %90, %90 : vector<64x512xf32>
    %92 = arith.truncf %91 : vector<64x512xf32> to vector<64x512xbf16>
    %c0_34 = arith.constant 0 : index
    %c0_35 = arith.constant 0 : index
    %c0_36 = arith.constant 0 : index
    %93 = vector.load %arg9[%c0_34, %c0_35, %c0_36] : memref<1x512x128xbf16, #tpu.memory_space<vmem>>, vector<1x512x128xbf16>
    %94 = vector.shape_cast %93 : vector<1x512x128xbf16> to vector<512x128xbf16>
    %cst_37 = arith.constant dense<0.000000e+00> : vector<64x128xf32>
    %95 = tpu.matmul %92, %94, %cst_37 {dimension_numbers = #tpu.dot_dimension_numbers<[1], [0], [0], [1], [0, 0, 1, 1], [], []>} : vector<64x512xbf16>, vector<512x128xbf16>, vector<64x128xf32> -> vector<64x128xf32>
    %96 = arith.addf %74, %95 : vector<64x128xf32>
    %c0_38 = arith.constant 0 : index
    %c0_39 = arith.constant 0 : index
    %97 = vector.load %arg14[%c0_38, %c0_39] : memref<64x128xf32, #tpu.memory_space<vmem>>, vector<64x128xf32>
    tpu.vector_store %arg14[%c0_38, %c0_39], %96 {strides = array<i32>} : memref<64x128xf32, #tpu.memory_space<vmem>>, vector<64x128xf32>,
    %c1_i32 = arith.constant 1 : i32
    %98 = arith.cmpi eq, %arg1, %c1_i32 : i32
    %99 = arith.extui %98 : i1 to i32
    %c0_i32_40 = arith.constant 0 : i32
    %100 = arith.cmpi ne, %99, %c0_i32_40 : i32
    scf.if %100 {
      %101 = arith.mulf %96, %96 : vector<64x128xf32>
      %cst_41 = arith.constant dense<0.000000e+00> : vector<64xf32>
      %102 = vector.multi_reduction <add>, %101, %cst_41 [1] : vector<64x128xf32> to vector<64xf32>
      %103 = vector.shape_cast %102 : vector<64xf32> to vector<64x1xf32>
      %cst_42 = arith.constant 1.280000e+02 : f32
      %104 = vector.broadcast %cst_42 : f32 to vector<64x1xf32>
      %105 = arith.divf %103, %104 : vector<64x1xf32>
      %cst_43 = arith.constant 9.99999997E-7 : f32
      %106 = vector.broadcast %cst_43 : f32 to vector<64x1xf32>
      %107 = arith.addf %105, %106 : vector<64x1xf32>
      %108 = math.rsqrt %107 : vector<64x1xf32>
      %109 = vector.broadcast %108 : vector<64x1xf32> to vector<64x128xf32>
      %110 = arith.mulf %96, %109 : vector<64x128xf32>
      %111 = vector.shape_cast %110 : vector<64x128xf32> to vector<4x16x128xf32>
      %cst_44 = arith.constant dense<0.000000e+00> : vector<4x128xf32>
      %112 = vector.multi_reduction <add>, %111, %cst_44 [1] : vector<4x16x128xf32> to vector<4x128xf32>
      %cst_45 = arith.constant 6.250000e-02 : f32
      %113 = vector.broadcast %cst_45 : f32 to vector<4x128xf32>
      %114 = arith.mulf %112, %113 : vector<4x128xf32>
      %c0_46 = arith.constant 0 : index
      %c0_47 = arith.constant 0 : index
      %115 = vector.load %arg10[%c0_46, %c0_47] : memref<128x10xf32, #tpu.memory_space<vmem>>, vector<128x10xf32>
      %cst_48 = arith.constant dense<0.000000e+00> : vector<4x10xf32>
      %116 = tpu.matmul %114, %115, %cst_48 {dimension_numbers = #tpu.dot_dimension_numbers<[1], [0], [0], [1], [0, 0, 1, 1], [], []>} : vector<4x128xf32>, vector<128x10xf32>, vector<4x10xf32> -> vector<4x10xf32>
      %c0_49 = arith.constant 0 : index
      %c0_50 = arith.constant 0 : index
      %c0_51 = arith.constant 0 : index
      %117 = vector.load %arg11[%c0_49, %c0_50, %c0_51] : memref<1x4x1xi32, #tpu.memory_space<vmem>>, vector<1x4x1xi32>
      %118 = vector.shape_cast %117 : vector<1x4x1xi32> to vector<4x1xi32>
      %119 = tpu.iota {dimensions = array<i32: 1>} : vector<4x10xi32>
      %120 = vector.broadcast %118 : vector<4x1xi32> to vector<4x10xi32>
      %121 = arith.cmpi eq, %119, %120 : vector<4x10xi32>
      %122 = arith.extui %121 : vector<4x10xi1> to vector<4x10xi32>
      %123 = arith.sitofp %122 : vector<4x10xi32> to vector<4x10xf32>
      %cst_52 = arith.constant dense<0xFF800000> : vector<4xf32>
      %124 = vector.multi_reduction <maximumf>, %116, %cst_52 [1] : vector<4x10xf32> to vector<4xf32>
      %125 = vector.shape_cast %124 : vector<4xf32> to vector<4x1xf32>
      %126 = vector.broadcast %125 : vector<4x1xf32> to vector<4x10xf32>
      %127 = arith.subf %116, %126 : vector<4x10xf32>
      %128 = math.exp %127 : vector<4x10xf32>
      %cst_53 = arith.constant dense<0.000000e+00> : vector<4xf32>
      %129 = vector.multi_reduction <add>, %128, %cst_53 [1] : vector<4x10xf32> to vector<4xf32>
      %130 = vector.shape_cast %129 : vector<4xf32> to vector<4x1xf32>
      %131 = math.log %130 : vector<4x1xf32>
      %132 = arith.addf %131, %125 : vector<4x1xf32>
      %133 = arith.mulf %116, %123 : vector<4x10xf32>
      %cst_54 = arith.constant dense<0.000000e+00> : vector<4xf32>
      %134 = vector.multi_reduction <add>, %133, %cst_54 [1] : vector<4x10xf32> to vector<4xf32>
      %135 = vector.shape_cast %134 : vector<4xf32> to vector<4x1xf32>
      %136 = arith.subf %132, %135 : vector<4x1xf32>
      %137 = vector.shape_cast %136 : vector<4x1xf32> to vector<1x4x1xf32>
      %c0_55 = arith.constant 0 : index
      %c0_56 = arith.constant 0 : index
      %c0_57 = arith.constant 0 : index
      %138 = vector.load %arg12[%c0_55, %c0_56, %c0_57] : memref<1x4x1xf32, #tpu.memory_space<vmem>>, vector<1x4x1xf32>
      tpu.vector_store %arg12[%c0_55, %c0_56, %c0_57], %137 {strides = array<i32>} : memref<1x4x1xf32, #tpu.memory_space<vmem>>, vector<1x4x1xf32>,
      %139 = vector.broadcast %125 : vector<4x1xf32> to vector<4x10xf32>
      %140 = arith.cmpf oeq, %116, %139 : vector<4x10xf32>
      %c10_i32 = arith.constant 10 : i32
      %141 = vector.broadcast %c10_i32 : i32 to vector<4x10xi32>
      %142 = arith.select %140, %119, %141 : vector<4x10xi1>, vector<4x10xi32>
      %cst_58 = arith.constant dense<2147483647> : vector<4xi32>
      %143 = vector.multi_reduction <minsi>, %142, %cst_58 [1] : vector<4x10xi32> to vector<4xi32>
      %144 = vector.shape_cast %143 : vector<4xi32> to vector<4x1xi32>
      %145 = arith.cmpi eq, %144, %118 : vector<4x1xi32>
      %146 = arith.extui %145 : vector<4x1xi1> to vector<4x1xi32>
      %147 = arith.sitofp %146 : vector<4x1xi32> to vector<4x1xf32>
      %148 = vector.shape_cast %147 : vector<4x1xf32> to vector<1x4x1xf32>
      %c0_59 = arith.constant 0 : index
      %c0_60 = arith.constant 0 : index
      %c0_61 = arith.constant 0 : index
      %149 = vector.load %arg13[%c0_59, %c0_60, %c0_61] : memref<1x4x1xf32, #tpu.memory_space<vmem>>, vector<1x4x1xf32>
      tpu.vector_store %arg13[%c0_59, %c0_60, %c0_61], %148 {strides = array<i32>} : memref<1x4x1xf32, #tpu.memory_space<vmem>>, vector<1x4x1xf32>,
    } else {
    }
    return
  }
  func.func @transform_0(%arg0: i32, %arg1: i32) -> (i32, i32) {
    %c0_i32 = arith.constant 0 : i32
    %c0_i32_0 = arith.constant 0 : i32
    return %arg0, %c0_i32 : i32, i32
  }
  func.func @transform_1(%arg0: i32, %arg1: i32) -> (i32, i32) {
    %c0_i32 = arith.constant 0 : i32
    %c0_i32_0 = arith.constant 0 : i32
    %c0_i32_1 = arith.constant 0 : i32
    return %c0_i32, %c0_i32_0 : i32, i32
  }
  func.func @transform_2(%arg0: i32, %arg1: i32) -> (i32, i32) {
    %c0_i32 = arith.constant 0 : i32
    %c0_i32_0 = arith.constant 0 : i32
    %c0_i32_1 = arith.constant 0 : i32
    return %c0_i32, %c0_i32_0 : i32, i32
  }
  func.func @transform_3(%arg0: i32, %arg1: i32) -> (i32, i32) {
    %c0_i32 = arith.constant 0 : i32
    %c0_i32_0 = arith.constant 0 : i32
    %c0_i32_1 = arith.constant 0 : i32
    return %c0_i32, %c0_i32_0 : i32, i32
  }
  func.func @transform_4(%arg0: i32, %arg1: i32) -> (i32, i32, i32) {
    %c0_i32 = arith.constant 0 : i32
    %c0_i32_0 = arith.constant 0 : i32
    %c0_i32_1 = arith.constant 0 : i32
    return %arg1, %c0_i32, %c0_i32_0 : i32, i32, i32
  }
  func.func @transform_5(%arg0: i32, %arg1: i32) -> (i32, i32, i32) {
    %c0_i32 = arith.constant 0 : i32
    %c0_i32_0 = arith.constant 0 : i32
    %c0_i32_1 = arith.constant 0 : i32
    return %arg1, %c0_i32, %c0_i32_0 : i32, i32, i32
  }
  func.func @transform_6(%arg0: i32, %arg1: i32) -> (i32, i32, i32) {
    %c0_i32 = arith.constant 0 : i32
    %c0_i32_0 = arith.constant 0 : i32
    %c0_i32_1 = arith.constant 0 : i32
    return %arg1, %c0_i32, %c0_i32_0 : i32, i32, i32
  }
  func.func @transform_7(%arg0: i32, %arg1: i32) -> (i32, i32, i32) {
    %c0_i32 = arith.constant 0 : i32
    %c0_i32_0 = arith.constant 0 : i32
    %c0_i32_1 = arith.constant 0 : i32
    return %arg1, %c0_i32, %c0_i32_0 : i32, i32, i32
  }
  func.func @transform_8(%arg0: i32, %arg1: i32) -> (i32, i32) {
    %c0_i32 = arith.constant 0 : i32
    %c0_i32_0 = arith.constant 0 : i32
    %c0_i32_1 = arith.constant 0 : i32
    return %c0_i32, %c0_i32_0 : i32, i32
  }
  func.func @transform_9(%arg0: i32, %arg1: i32) -> (i32, i32, i32) {
    %c0_i32 = arith.constant 0 : i32
    %c0_i32_0 = arith.constant 0 : i32
    %c0_i32_1 = arith.constant 0 : i32
    return %arg0, %c0_i32, %c0_i32_0 : i32, i32, i32
  }
  func.func @transform_10(%arg0: i32, %arg1: i32) -> (i32, i32, i32) {
    %c0_i32 = arith.constant 0 : i32
    %c0_i32_0 = arith.constant 0 : i32
    %c0_i32_1 = arith.constant 0 : i32
    return %arg0, %c0_i32, %c0_i32_0 : i32, i32, i32
  }
  func.func @transform_11(%arg0: i32, %arg1: i32) -> (i32, i32, i32) {
    %c0_i32 = arith.constant 0 : i32
    %c0_i32_0 = arith.constant 0 : i32
    %c0_i32_1 = arith.constant 0 : i32
    return %arg0, %c0_i32, %c0_i32_0 : i32, i32, i32
  }
}

</mosaic_0001>

<bundles_post_ra>
// kernel: vit_classifier_forward.1
= control target key start
LH: loop header
LB: loop body
LE: loop exit
PB: predicated region body
PF: predicated region fallthrough
CT: control target
= control target key end

     0   :  { %s4264_s17 = smov 0   ;;  %s4266_s18 = smov 0   ;;  %s4999_s0 = inlined_call_operand.vmem [shape: bf16[128,256], index: 0, kind: input, shape index: {}]   ;;  %s5000_s1 = inlined_call_operand.vmem [shape: bf16[256,128], index: 1, kind: input, shape index: {}]   ;;  %s5001_s2 = inlined_call_operand.vmem [shape: f32[16,128], index: 2, kind: input, shape index: {}]   ;;  %s5002_s3 = inlined_call_operand.vmem [shape: f32[64,64], index: 3, kind: input, shape index: {}]   ;;  %s5003_s4 = inlined_call_operand.vmem [shape: bf16[2,128,384], index: 4, kind: input, shape index: {}]   ;;  %s5004_s5 = inlined_call_operand.vmem [shape: bf16[2,128,128], index: 5, kind: input, shape index: {}]   ;;  %s5005_s6 = inlined_call_operand.vmem [shape: bf16[2,128,512], index: 6, kind: input, shape index: {}]   ;;  %s5006_s7 = inlined_call_operand.vmem [shape: bf16[2,512,128], index: 7, kind: input, shape index: {}]   ;;  %s5007_s8 = inlined_call_operand.vmem [shape: f32[128,10], index: 8, kind: input, shape index: {}]   ;;  %s5008_s9 = inlined_call_operand.vmem [shape: s32[2,4,1], index: 9, kind: input, shape index: {}]   ;;  %s5009_s10 = inlined_call_operand.vmem [shape: f32[2,4,1], index: 10, kind: output, shape index: {0}]   ;;  %s5010_s11 = inlined_call_operand.vmem [shape: f32[2,4,1], index: 11, kind: output, shape index: {1}]  }
   0x1   :  { %5015 = sst [smem:[#allocation8_spill]] %s5007_s8  ;;  %s4268_s19 = smov 0  }
   0x2   :  { %s4270_s20 = smov 0   ;;  %s4272_s21 = smov 0  }
   0x3 LB: > { %5016 = sst [smem:[#allocation3_spill]] %s4188_s19  ;;  %s31_s22 = sadd.s32 1, %s4188_s19  ;;  %s4196_s21 = sphi %s4272_s21, %s22_s21   ;;  %s4192_s20 = sphi %s4270_s20, %s5026_s20   ;;  %s4188_s19 = sphi %s4268_s19, %s5025_s19   ;;  %s4184_s18 = sphi %s4266_s18, %s5024_s18   ;;  %s4180_s17 = sphi %s4264_s17, %s5023_s17  }
   0x4   : > { %5017 = sst [smem:[#allocation4_spill]] %s4192_s20  ;;  %s34_s23 = sadd.s32 1, %s4192_s20 }
   0x5   : > { %5018 = sst [smem:[#allocation5_spill]] %s4196_s21  ;;  %p32_p0 = scmp.ge.s32.totalorder %s31_s22, 2 }
   0x6   : > { %p3262_p1 = scmp.ge.s32.totalorder %s4196_s21, 1  ;;  %p403_p2 = scmp.lt.s32.totalorder %s4196_s21, 5 }
   0x7   : > { %s5028_s22 = smov (%p32_p0, %s31_s22), 0  ;;  %s5030_s23 = smov (!%p32_p0, %s34_s23), %s4192_s20 }
   0x8   : > { %5019 = sst [smem:[#allocation6_spill]] %s5028_s22  ;;  %p404_p3 = pnand %p3262_p1, %p403_p2 }
   0x9   : > { %p36_p4 = scmp.ge.s32.totalorder %s5030_s23, 2  ;;  %s3263_s24 = sshll.u32 (!%p404_p3), %s4184_s18, 3 }
   0xa   : > { %407 = sbr.rel (%p404_p3) target bundleno = 3831 (0xef7), region = 60  ;;  %p478_p5 = scmp.lt.s32.totalorder (!%p404_p3), %s4180_s17, 1 }
   0xb   : > { %s5032_s23 = smov (%p36_p4, %s5030_s23), 0  ;;  %p472_p6 = scmp.lt.s32.totalorder (!%p404_p3), %s3263_s24, 15 }
   0xc   : > { %5020 = sst [smem:[#allocation7_spill]] %s5032_s23  ;;  %p498_p7 = scmp.lt.s32.totalorder (!%p404_p3), %s4184_s18, 1 }
   0xd   : > { %p3276_p8 = scmp.ne.s32.totalorder (!%p404_p3), %s4180_s17, 0 }
  0x11   : > { %s479_s25 = scalar_select %p478_p5, %s4180_s17, 1 }
  0x12   : > { %s5034_s24 = smov (!%p472_p6, %s3263_s24), 15  ;;  %s5036_s18 = smov (!%p498_p7, %s4184_s18), 1 }
  0x13   : > { %s3838_s26 = smul.u32 192, %s479_s25  ;;  %s3427_s27 = sshll.u32 %s479_s25, 6  ;;  %v3885_v0 = vld [vmem:[%s5000_s1 + $0x40] sm:$0xff] (!%p3276_p8)   ;;  %v3887_v2 = vld [vmem:[%s5000_s1 + $0x48] sm:$0xff] (!%p3276_p8)   ;;  %v3889_v4 = vld [vmem:[%s5000_s1 + $0x50] sm:$0xff] (!%p3276_p8)  }
  0x14   : > { %s3426_s28 = sshll.u32 %s5034_s24, 3  ;;  %s4305_s12 = scalar_lea.vmem %s5004_s5, %s3427_s27  ;;  %v3886_v1 = vld [vmem:[%s5000_s1] sm:$0xff] (!%p3276_p8)   ;;  %3430 = vmatprep.subr.bf16.mxu0 (!%p3276_p8), %v3885_v0  ;;  %3806 = vmatprep.subr.bf16.mxu1 (!%p3276_p8), %v3885_v0  ;;  %v3888_v3 = vld [vmem:[%s5000_s1 + $0x8] sm:$0xff] (!%p3276_p8)   ;;  %v3890_v5 = vld [vmem:[%s5000_s1 + $0x10] sm:$0xff] (!%p3276_p8)  }
  0x15   : > { %s4310_s15 = scalar_lea.vmem %s4999_s0, %s3426_s28  ;;  %s4315_s22 = scalar_lea.vmem %s5003_s4, %s3838_s26  ;;  %3431 = vmatpush3.bf16.msra.mxu0 (!%p3276_p8), %v3886_v1  ;;  %3814 = vmatpush3.bf16.msra.mxu1 (!%p3276_p8), %v3886_v1  ;;  %v3891_v6 = vld [vmem:[%s5000_s1 + $0x58] sm:$0xff] (!%p3276_p8)   ;;  %v3893_v8 = vld [vmem:[%s5000_s1 + $0x60] sm:$0xff] (!%p3276_p8)   ;;  %v3895_v10 = vld [vmem:[%s5000_s1 + $0x68] sm:$0xff] (!%p3276_p8)  }
  0x16   : > { %s3428_s20 = sshll.u32 %s479_s25, 8  ;;  %s4328_s30 = sshll.u32 %s5036_s18, 2  ;;  %3432 = vmatprep.subr.bf16.mxu0 (!%p3276_p8), %v3887_v2  ;;  %3807 = vmatprep.subr.bf16.mxu1 (!%p3276_p8), %v3887_v2  ;;  %v3892_v7 = vld [vmem:[%s5000_s1 + $0x18] sm:$0xff] (!%p3276_p8)   ;;  %v3894_v9 = vld [vmem:[%s5000_s1 + $0x20] sm:$0xff] (!%p3276_p8)   ;;  %v3896_v13 = vld [vmem:[%s5000_s1 + $0x28] sm:$0xff] (!%p3276_p8)  }
  0x17   : > { %s4320_s24 = scalar_lea.vmem %s5005_s6, %s3428_s20  ;;  %s4325_s27 = scalar_lea.vmem %s5006_s7, %s3428_s20  ;;  %v3903_v11 = vld [vmem:[%s4310_s15 + $0x4] ss:$8 sps:$4 sm:$0xff] (!%p3276_p8)   ;;  %v3897_v14 = vld [vmem:[%s5000_s1 + $0x70] sm:$0xff] (!%p3276_p8)   ;;  %v3899_v16 = vld [vmem:[%s5000_s1 + $0x78] sm:$0xff] (!%p3276_p8)  }
  0x18   : > { %s501_s23 = scalar_lea.vmem %s5008_s9, %s4328_s30  ;;  %s505_s19 = scalar_lea.vmem %s5009_s10, %s4328_s30  ;;  %v3906_v12 = vld [vmem:[%s4310_s15 + $0x24] ss:$8 sps:$4 sm:$0xff] (!%p3276_p8)   ;;  %723 = vmatprep.mubr.bf16.mxu0 (!%p3276_p8), %v3903_v11  ;;  %v3898_v15 = vld [vmem:[%s5000_s1 + $0x30] sm:$0xff] (!%p3276_p8)   ;;  %v3900_v17 = vld [vmem:[%s5000_s1 + $0x38] sm:$0xff] (!%p3276_p8)  }
  0x19   : > { %s509_s8 = scalar_lea.vmem %s5010_s11, %s4328_s30  ;;  %514 = sbr.rel (%p3276_p8) target bundleno = 280 (0x118), region = 64  ;;  %3433 = vmatpush3.bf16.msra.mxu0 (!%p3276_p8), %v3888_v3  ;;  %3815 = vmatpush3.bf16.msra.mxu1 (!%p3276_p8), %v3888_v3  ;;  %v3901_v18 = vld [vmem:[%s4310_s15] ss:$8 sps:$4 sm:$0xff] (!%p3276_p8)   ;;  %v3907_v20 = vld [vmem:[%s4310_s15 + $0x14] ss:$8 sps:$4 sm:$0xff] (!%p3276_p8)  }
  0x1a   : > { %3434 = vmatprep.subr.bf16.mxu0 (!%p3276_p8), %v3889_v4  ;;  %3808 = vmatprep.subr.bf16.mxu1 (!%p3276_p8), %v3889_v4  ;;  %v3904_v19 = vld [vmem:[%s4310_s15 + $0x20] ss:$8 sps:$4 sm:$0xff] (!%p3276_p8)   ;;  %v3909_v21 = vld [vmem:[%s4310_s15 + $0x34] ss:$8 sps:$4 sm:$0xff] (!%p3276_p8)   ;;  %v3911_v22 = vld [vmem:[%s4310_s15 + $0x10] ss:$8 sps:$4 sm:$0xff] (!%p3276_p8)  }
  0x1b   : > { %739 = vmatprep.mubr.bf16.mxu1 (!%p3276_p8), %v3906_v12  ;;  %v3912_v23 = vld [vmem:[%s4310_s15 + $0x30] ss:$8 sps:$4 sm:$0xff] (!%p3276_p8)   ;;  %v756_v27 = vld [vmem:[%s5001_s2] sm:$0xff] (!%p3276_p8)  ;;  %v757_v34 = vld [vmem:[%s5001_s2 + $0x8] sm:$0xff] (!%p3276_p8) }
  0x1d   : > { %3435 = vmatpush3.bf16.msra.mxu0 (!%p3276_p8), %v3890_v5  ;;  %3816 = vmatpush3.bf16.msra.mxu1 (!%p3276_p8), %v3890_v5 }
  0x1e   : > { %3436 = vmatprep.subr.bf16.mxu0 (!%p3276_p8), %v3891_v6  ;;  %3809 = vmatprep.subr.bf16.mxu1 (!%p3276_p8), %v3891_v6 }
  0x21   : > { %3437 = vmatpush3.bf16.msra.mxu0 %v3892_v7  ;;  %3817 = vmatpush3.bf16.msra.mxu1 %v3892_v7 }
  0x22   : > { %3438 = vmatprep.subr.bf16.mxu0 %v3893_v8  ;;  %3810 = vmatprep.subr.bf16.mxu1 %v3893_v8 }
  0x25   : > { %3439 = vmatpush3.bf16.msra.mxu0 %v3894_v9  ;;  %3818 = vmatpush3.bf16.msra.mxu1 %v3894_v9 }
  0x26   : > { %3440 = vmatprep.subr.bf16.mxu0 %v3895_v10  ;;  %3811 = vmatprep.subr.bf16.mxu1 %v3895_v10 }
  0x29   : > { %3441 = vmatpush3.bf16.msra.mxu0 %v3896_v13  ;;  %3819 = vmatpush3.bf16.msra.mxu1 %v3896_v13 }
  0x2a   : > { %3442 = vmatprep.subr.bf16.mxu0 %v3897_v14  ;;  %3812 = vmatprep.subr.bf16.mxu1 %v3897_v14 }
  0x2d   : > { %3443 = vmatpush3.bf16.msra.mxu0 %v3898_v15  ;;  %3820 = vmatpush3.bf16.msra.mxu1 %v3898_v15 }
  0x2e   : > { %3444 = vmatprep.subr.bf16.mxu0 %v3899_v16  ;;  %3813 = vmatprep.subr.bf16.mxu1 %v3899_v16 }
  0x31   : > { %3445 = vmatpush3.bf16.msra.mxu0 %v3900_v17  ;;  %3821 = vmatpush3.bf16.msra.mxu1 %v3900_v17 }
  0x34   : > { %724 = vmatmul.mubr.bf16.vlgmr.msra.gmra.mrb[0].mxu0 %v3901_v18  ;;  %740 = vmatmul.mubr.bf16.vlgmr.msra.gmra.mrb[0].mxu1 %v3904_v19 }
  0x35   : > { %731 = vmatprep.mubr.bf16.mxu0 %v3907_v20  ;;  %747 = vmatprep.mubr.bf16.mxu1 %v3909_v21 }
  0x3c   : > { %732 = vmatmul.mubr.bf16.gmra.mrb[4].mxu0 %v3911_v22  ;;  %748 = vmatmul.mubr.bf16.gmra.mrb[4].mxu1 %v3912_v23 }
 0x107   : > { %v3446_v24 = vpop.f32.mrb[0].mxu0  ;;  %v3458_v25 = vpop.f32.mrb[0].mxu1 }
 0x108   : > { %v3447_v26 = vpop.f32.mrb[1].mxu0  ;;  %v3459_v28 = vpop.f32.mrb[1].mxu1 }
 0x109   : > { %v3448_v29 = vadd.f32 %v3447_v26, %v3446_v24  ;;  %v3460_v30 = vadd.f32 %v3459_v28, %v3458_v25  ;;  %v3449_v31 = vpop.f32.mrb[2].mxu0  ;;  %v3461_v32 = vpop.f32.mrb[2].mxu1 }
 0x10a   : > { %v3450_v33 = vpop.f32.mrb[3].mxu0  ;;  %v3462_v35 = vpop.f32.mrb[3].mxu1 }
 0x10b   : > { %v758_v36 = vadd.f32 %v3448_v29, %v756_v27  ;;  %v762_v37 = vadd.f32 %v3460_v30, %v756_v27  ;;  %v3451_v38 = vadd.f32 %v3450_v33, %v3449_v31  ;;  %v3463_v39 = vadd.f32 %v3462_v35, %v3461_v32 }
 0x10d   : > { %766 = vst [vmem:[#allocation2] sm:$0xff] %v758_v36  ;;  %770 = vst [vmem:[#allocation2 + $0x20] sm:$0xff] %v762_v37  ;;  %v759_v40 = vadd.f32 %v3451_v38, %v757_v34  ;;  %v763_v41 = vadd.f32 %v3463_v39, %v757_v34 }
 0x10f   : > { %767 = vst [vmem:[#allocation2 + $0x8] sm:$0xff] %v759_v40  ;;  %771 = vst [vmem:[#allocation2 + $0x28] sm:$0xff] %v763_v41  ;;  %v3452_v42 = vpop.f32.mrb[4].mxu0  ;;  %v3464_v43 = vpop.f32.mrb[4].mxu1 }
 0x110   : > { %v3453_v44 = vpop.f32.mrb[5].mxu0  ;;  %v3465_v45 = vpop.f32.mrb[5].mxu1 }
 0x111   : > { %v3454_v46 = vadd.f32 %v3453_v44, %v3452_v42  ;;  %v3466_v47 = vadd.f32 %v3465_v45, %v3464_v43  ;;  %v3455_v48 = vpop.f32.mrb[6].mxu0  ;;  %v3467_v49 = vpop.f32.mrb[6].mxu1 }
 0x112   : > { %v3456_v50 = vpop.f32.mrb[7].mxu0  ;;  %v3468_v51 = vpop.f32.mrb[7].mxu1 }
 0x113   : > { %v760_v52 = vadd.f32 %v3454_v46, %v756_v27  ;;  %v764_v53 = vadd.f32 %v3466_v47, %v756_v27  ;;  %v3457_v54 = vadd.f32 %v3456_v50, %v3455_v48  ;;  %v3469_v55 = vadd.f32 %v3468_v51, %v3467_v49 }
 0x115   : > { %768 = vst [vmem:[#allocation2 + $0x10] sm:$0xff] %v760_v52  ;;  %772 = vst [vmem:[#allocation2 + $0x30] sm:$0xff] %v764_v53  ;;  %v761_v56 = vadd.f32 %v3457_v54, %v757_v34  ;;  %v765_v57 = vadd.f32 %v3469_v55, %v757_v34 }
 0x117   : > { %769 = vst [vmem:[#allocation2 + $0x18] sm:$0xff] %v761_v56  ;;  %773 = vst [vmem:[#allocation2 + $0x38] sm:$0xff] %v765_v57 }
 0x118 PF: > { %v4405_v58 = vld [vmem:[#allocation2] sm:$0xff]  ;;  %v4409_v60 = vld [vmem:[#allocation2 + $0x8] sm:$0xff]  ;;  %v3923_v17 = vld [vmem:[%s4315_s22 + $0x30] ss:$12 sps:$4 sm:$0xff]   ;;  %v4198_v34 = vmov 0   ;;  %vm1177_vm0 = vcmask 523264  }
 0x119   : > { %v782_v61 = vmul.f32 %v4405_v58, %v4405_v58  ;;  %v4417_v0 = vld [vmem:[#allocation2 + $0x28] sm:$0xff]  ;;  %v4419_v1 = vld [vmem:[#allocation2 + $0x20] sm:$0xff]  ;;  %v783_v2 = vmul.f32 %v4409_v60, %v4409_v60  ;;  %v3928_v21 = vld [vmem:[%s4315_s22 + $0x50] ss:$12 sps:$4 sm:$0xff]   ;;  %1035 = vmatprep.mubr.bf16.mxu0 %v4198_v34  ;;  %s4199_s21 = smov 64   ;;  %p3421_p9 = scmp.ne.s32.totalorder %s4180_s17, 1 }
 0x11a   : > { %v3913_v4 = vld [vmem:[%s4315_s22 + $0x4] ss:$12 sps:$4 sm:$0xff]   ;;  %v3915_v5 = vld [vmem:[%s4315_s22] ss:$12 sps:$4 sm:$0xff]   ;;  %v3916_v6 = vld [vmem:[%s4315_s22 + $0x8] ss:$12 sps:$4 sm:$0xff]   ;;  %v787_v11 = vmul.f32 %v4417_v0, %v4417_v0  ;;  %v786_v12 = vmul.f32 %v4419_v1, %v4419_v1 }
 0x11b   : > { %790 = vadd.xlane.f32.xlu0 %v782_v61  ;;  %1003 = vmatprep.subr.bf16.mxu0 %v3913_v4  ;;  %v3917_v7 = vld [vmem:[%s4315_s22 + $0x1c] ss:$12 sps:$4 sm:$0xff]   ;;  %v3919_v10 = vld [vmem:[%s4315_s22 + $0x18] ss:$12 sps:$4 sm:$0xff]   ;;  %v3920_v13 = vld [vmem:[%s4315_s22 + $0x20] ss:$12 sps:$4 sm:$0xff]  }
 0x11c   : > { %v4407_v59 = vld [vmem:[#allocation2 + $0x10] sm:$0xff]  ;;  %1004 = vmatpush1.bf16.msra.mxu0 %v3915_v5  ;;  %3627 = vmatprep.subr.bf16.mxu1 %v3916_v6  ;;  %v3924_v18 = vld [vmem:[%s4315_s22 + $0x38] ss:$12 sps:$4 sm:$0xff]   ;;  %v3931_v23 = vld [vmem:[%s4315_s22 + $0x60] ss:$12 sps:$4 sm:$0xff]   ;;  %vm4201_vm1 = vmmov (!%p3421_p9), 0  }
 0x11d   : > { %v784_v62 = vmul.f32 %v4407_v59, %v4407_v59  ;;  %v4431_v9 = vld [vmem:[#allocation2 + $0x30] sm:$0xff]  ;;  %3628 = vmatpush3.bf16.msra.mxu1 %v3916_v6  ;;  %1005 = vmatprep.subr.bf16.mxu0 %v3917_v7  ;;  %v3925_v19 = vld [vmem:[%s4315_s22 + $0x4c] ss:$12 sps:$4 sm:$0xff]   ;;  %v3933_v25 = vld [vmem:[%s4315_s22 + $0x7c] ss:$12 sps:$4 sm:$0xff]   ;;  %vm2976_vm2 = vcmask (!%p3421_p9), 1041409  }
 0x11e   : > { %v4415_v63 = vld [vmem:[#allocation2 + $0x18] sm:$0xff]  ;;  %v3921_v14 = vld [vmem:[%s4315_s22 + $0x34] ss:$12 sps:$4 sm:$0xff]   ;;  %3629 = vmatprep.subr.bf16.mxu1 %v3920_v13  ;;  %v788_v16 = vmul.f32 %v4431_v9, %v4431_v9  ;;  %v3929_v22 = vld [vmem:[%s4315_s22 + $0x64] ss:$12 sps:$4 sm:$0xff]   ;;  %vm2978_vm3 = vcmask (!%p3421_p9), 1042434  }
 0x11f   : > { %794 = vadd.xlane.f32.xlu1 %v784_v62  ;;  %v785_v3 = vmul.f32 %v4415_v63, %v4415_v63  ;;  %v4429_v8 = vld [vmem:[#allocation2 + $0x38] sm:$0xff]  ;;  %792 = vadd.xlane.f32.xlu0 %v783_v2  ;;  %v3927_v20 = vld [vmem:[%s4315_s22 + $0x48] ss:$12 sps:$4 sm:$0xff]   ;;  %v3936_v27 = vld [vmem:[%s4315_s22 + $0x80] ss:$12 sps:$4 sm:$0xff]   ;;  %vm2980_vm4 = vcmask (!%p3421_p9), 1043459  }
 0x120   : > { %1006 = vmatpush1.bf16.msra.mxu0 %v3919_v10  ;;  %v789_v15 = vmul.f32 %v4429_v8, %v4429_v8  ;;  %v3932_v24 = vld [vmem:[%s4315_s22 + $0x68] ss:$12 sps:$4 sm:$0xff]   ;;  %v3935_v26 = vld [vmem:[%s4315_s22 + $0x78] ss:$12 sps:$4 sm:$0xff]   ;;  %v3939_v29 = vld [vmem:[%s4315_s22 + $0x90] ss:$12 sps:$4 sm:$0xff]  }
 0x121   : > { %3630 = vmatpush3.bf16.msra.mxu1 %v3920_v13  ;;  %1007 = vmatprep.subr.bf16.mxu0 %v3921_v14  ;;  %v3937_v28 = vld [vmem:[%s4315_s22 + $0x94] ss:$12 sps:$4 sm:$0xff]   ;;  %v3940_v30 = vld [vmem:[%s4315_s22 + $0x98] ss:$12 sps:$4 sm:$0xff]   ;;  %v3944_v33 = vld [vmem:[%s4315_s22 + $0xb0] ss:$12 sps:$4 sm:$0xff]  }
 0x122   : > { %3631 = vmatprep.subr.bf16.mxu1 %v3924_v18  ;;  %v3941_v31 = vld [vmem:[%s4315_s22 + $0xac] ss:$12 sps:$4 sm:$0xff]   ;;  %v3943_v32 = vld [vmem:[%s4315_s22 + $0xa8] ss:$12 sps:$4 sm:$0xff]   ;;  %vm3062_vm5 = vcmask (!%p3421_p9), 76800   ;;  %vm3080_vm9 = vcmask (!%p3421_p9), 3072  }
 0x123   : > { %796 = vadd.xlane.f32.xlu1 %v785_v3  ;;  %798 = vadd.xlane.f32.xlu0 %v786_v12 }
 0x124   : > { %1008 = vmatpush1.bf16.msra.mxu0 %v3923_v17 }
 0x125   : > { %3632 = vmatpush3.bf16.msra.mxu1 %v3924_v18  ;;  %1009 = vmatprep.subr.bf16.mxu0 %v3925_v19 }
 0x126   : > { %3633 = vmatprep.subr.bf16.mxu1 %v3928_v21 }
 0x127   : > { %800 = vadd.xlane.f32.xlu1 %v787_v11  ;;  %802 = vadd.xlane.f32.xlu0 %v788_v16 }
 0x128   : > { %1010 = vmatpush1.bf16.msra.mxu0 %v3927_v20 }
 0x129   : > { %3634 = vmatpush3.bf16.msra.mxu1 %v3928_v21  ;;  %1011 = vmatprep.subr.bf16.mxu0 %v3929_v22 }
 0x12a   : > { %3635 = vmatprep.subr.bf16.mxu1 %v3932_v24 }
 0x12b   : > { %804 = vadd.xlane.f32.xlu1 %v789_v15 }
 0x12c   : > { %1012 = vmatpush1.bf16.msra.mxu0 %v3931_v23 }
 0x12d   : > { %3636 = vmatpush3.bf16.msra.mxu1 %v3932_v24  ;;  %1013 = vmatprep.subr.bf16.mxu0 %v3933_v25 }
 0x12e   : > { %3637 = vmatprep.subr.bf16.mxu1 %v3936_v27 }
 0x130   : > { %1014 = vmatpush1.bf16.msra.mxu0 %v3935_v26 }
 0x131   : > { %3638 = vmatpush3.bf16.msra.mxu1 %v3936_v27  ;;  %1015 = vmatprep.subr.bf16.mxu0 %v3937_v28 }
 0x132   : > { %3639 = vmatprep.subr.bf16.mxu1 %v3940_v30 }
 0x134   : > { %1016 = vmatpush1.bf16.msra.mxu0 %v3939_v29 }
 0x135   : > { %3640 = vmatpush3.bf16.msra.mxu1 %v3940_v30  ;;  %1017 = vmatprep.subr.bf16.mxu0 %v3941_v31 }
 0x136   : > { %3641 = vmatprep.subr.bf16.mxu1 %v3944_v33 }
 0x138   : > { %1018 = vmatpush1.bf16.msra.mxu0 %v3943_v32 }
 0x139   : > { %3642 = vmatpush3.bf16.msra.mxu1 %v3944_v33 }
 0x1a8   : > { %v791_v35 = vpop.xlane.xlu0 %790 }
 0x1a9   : > { %v807_v37 = vmul.f32 0.0078125, %v791_v35 }
 0x1ab   : > { %v815_v39 = vadd.f32 1e-06, %v807_v37 }
 0x1ac   : > { %v795_v36 = vpop.xlane.xlu1 %794  ;;  %v793_v41 = vpop.xlane.xlu0 %792 }
 0x1ad   : > { %v809_v38 = vmul.f32 0.0078125, %v795_v36  ;;  %v808_v43 = vmul.f32 0.0078125, %v793_v41 }
 0x1af   : > { %v817_v40 = vadd.f32 1e-06, %v809_v38  ;;  %v816_v45 = vadd.f32 1e-06, %v808_v43 }
 0x1b0   : > { %v797_v42 = vpop.xlane.xlu1 %796  ;;  %v799_v48 = vpop.xlane.xlu0 %798 }
 0x1b1   : > { %v810_v44 = vmul.f32 0.0078125, %v797_v42  ;;  %4033 = vrsqrt.f32 %v817_v40  ;;  %v811_v50 = vmul.f32 0.0078125, %v799_v48 }
 0x1b2   : > { %4035 = vrsqrt.f32 %v815_v39 }
 0x1b3   : > { %v818_v46 = vadd.f32 1e-06, %v810_v44  ;;  %4037 = vrsqrt.f32 %v816_v45  ;;  %v819_v52 = vadd.f32 1e-06, %v811_v50 }
 0x1b4   : > { %v801_v47 = vpop.xlane.xlu1 %800  ;;  %v803_v54 = vpop.xlane.xlu0 %802 }
 0x1b5   : > { %v812_v49 = vmul.f32 0.0078125, %v801_v47  ;;  %4039 = vrsqrt.f32 %v818_v46  ;;  %v813_v56 = vmul.f32 0.0078125, %v803_v54 }
 0x1b7   : > { %v820_v51 = vadd.f32 1e-06, %v812_v49  ;;  %v821_v61 = vadd.f32 1e-06, %v813_v56 }
 0x1b8   : > { %v805_v53 = vpop.xlane.xlu1 %804 }
 0x1b9   : > { %4041 = vrsqrt.f32 %v820_v51  ;;  %v814_v55 = vmul.f32 0.0078125, %v805_v53 }
 0x1ba   : > { %4043 = vrsqrt.f32 %v819_v52 }
 0x1bb   : > { %v822_v57 = vadd.f32 1e-06, %v814_v55  ;;  %v4034_v62 = vpop.eup %4033 }
 0x1bc   : > { %v4036_v2 = vpop.eup %4035  ;;  %v833_v4 = vmul.f32 %v4034_v62, %v4407_v59 }
 0x1bd   : > { %4045 = vrsqrt.f32 %v822_v57  ;;  %v4038_v3 = vpop.eup %4037  ;;  %v831_v6 = vmul.f32 %v4036_v2, %v4405_v58 }
 0x1be   : > { %4047 = vrsqrt.f32 %v821_v61  ;;  %v832_v7 = vmul.f32 %v4038_v3, %v4409_v60  ;;  %v4532_v61 = vld [vmem:[%s5002_s3] sm:$0xff] }
 0x1bf   : > { %v4040_v5 = vpop.eup %4039 }
 0x1c0   : > { %v834_v10 = vmul.f32 %v4040_v5, %v4415_v63  ;;  %v839_v11 = vpack.c.bf16 %v832_v7, %v831_v6  ;;  %v4537_v5 = vld [vmem:[%s5002_s3 + $0x8] sm:$0xff]  ;;  %v4542_v6 = vld [vmem:[%s5002_s3 + $0x10] sm:$0xff] }
 0x1c2   : > { %v840_v13 = vpack.c.bf16 %v834_v10, %v833_v4  ;;  %1036 = vmatmul.mubr.bf16.vlgmr.msra.gmra.mrb[0].mxu0 %v839_v11  ;;  %3643 = vmatprep.mubr.bf16.mxu1 %v839_v11 }
 0x1c3   : > { %v4042_v12 = vpop.eup %4041  ;;  %1045 = vmatprep.mubr.bf16.mxu0 %v4198_v34 }
 0x1c4   : > { %v4044_v14 = vpop.eup %4043  ;;  %v836_v15 = vmul.f32 %v4042_v12, %v4417_v0  ;;  %3644 = vmatmul.mubr.bf16.vlgmr.msra.gmra.mrb[0].mxu1 %v840_v13  ;;  %v4548_v12 = vld [vmem:[%s5002_s3 + $0x18] sm:$0xff] }
 0x1c5   : > { %v835_v59 = vmul.f32 %v4044_v14, %v4419_v1 }
 0x1c7   : > { %v4046_v16 = vpop.eup %4045  ;;  %v841_v17 = vpack.c.bf16 %v836_v15, %v835_v59 }
 0x1c8   : > { %v4048_v58 = vpop.eup %4047  ;;  %v838_v60 = vmul.f32 %v4046_v16, %v4429_v8 }
 0x1c9   : > { %3647 = vmatprep.mubr.bf16.mxu1 %v841_v17  ;;  %v837_v63 = vmul.f32 %v4048_v58, %v4431_v9 }
 0x1ca   : > { %1046 = vmatmul.mubr.bf16.gmra.mrb[4].mxu0 %v840_v13 }
 0x1cb   : > { %v842_v18 = vpack.c.bf16 %v838_v60, %v837_v63  ;;  %1055 = vmatprep.mubr.bf16.mxu0 %v4198_v34  ;;  %v4558_v60 = vld [vmem:[%s5002_s3 + $0x20] sm:$0xff] }
 0x1cd   : > { %3648 = vmatmul.mubr.bf16.gmra.mrb[4].mxu1 %v842_v18 }
 0x1d2   : > { %1056 = vmatmul.mubr.bf16.gmra.mrb[8].mxu0 %v841_v17 }
 0x1d3   : > { %1065 = vmatprep.mubr.bf16.mxu0 %v4198_v34 }
 0x1da   : > { %1066 = vmatmul.mubr.bf16.gmra.mrb[12].mxu0 %v842_v18 }
 0x295   : > { %v1037_v0 = vpop.f32.mrb[0].mxu0 }
 0x296   : > { %v1039_v19 = vpop.f32.mrb[1].mxu0 }
 0x297   : > { %v3645_v1 = vpop.f32.mrb[0].mxu1  ;;  %v1041_v20 = vpop.f32.mrb[2].mxu0 }
 0x298   : > { %v1110_v21 = vpop.f32.mrb[1].mxu1  ;;  %v4473_v22 = vpack.c.bf16 %v1041_v20, %v1037_v0  ;;  %v1043_v8 = vpop.f32.mrb[3].mxu0  ;;  %v4564_v20 = vld [vmem:[%s5002_s3 + $0x28] sm:$0xff] }
 0x299   : > { %v3646_v23 = vpop.f32.mrb[2].mxu1  ;;  %v4475_v9 = vpack.c.bf16 %v1043_v8, %v1039_v19 }
 0x29a   : > { %v4477_v24 = vpack.c.bf16 %v3646_v23, %v3645_v1  ;;  %v1113_v25 = vpop.f32.mrb[3].mxu1  ;;  %3659 = vmatprep.mubr.msk.bf16.mxu0 %vm1177_vm0, %v4473_v22 }
 0x29b   : > { %v4479_v26 = vpack.c.bf16 %v1113_v25, %v1110_v21  ;;  %3830 = vmatprep.subr.msk.bf16.mxu0 %vm1177_vm0, %v4475_v9  ;;  %v1191_v27 = vsel %vm1177_vm0, %v4475_v9, 0  ;;  %v4569_v21 = vld [vmem:[%s5002_s3 + $0x30] sm:$0xff] }
 0x29c   : > { %3652 = vmatpush3.bf16.xpose.msra.mxu0 %v1191_v27 }
 0x29d   : > { %3667 = vmatprep.subr.bf16.mxu1 %v4479_v26  ;;  %v1047_v28 = vpop.f32.mrb[4].mxu0 }
 0x29e   : > { %3668 = vmatpush3.bf16.msra.mxu1 %v4479_v26  ;;  %v1049_v29 = vpop.f32.mrb[5].mxu0 }
 0x29f   : > { %3669 = vmatprep.subr.bf16.mxu1 %v4477_v24  ;;  %v1051_v31 = vpop.f32.mrb[6].mxu0 }
 0x2a0   : > { %v3649_v30 = vpop.f32.mrb[4].mxu1  ;;  %v4490_v33 = vpack.c.bf16 %v1051_v31, %v1047_v28  ;;  %v1053_v35 = vpop.f32.mrb[7].mxu0  ;;  %v4576_v28 = vld [vmem:[%s5002_s3 + $0x38] sm:$0xff] }
 0x2a1   : > { %v1126_v32 = vpop.f32.mrb[5].mxu1  ;;  %v4492_v37 = vpack.c.bf16 %v1053_v35, %v1049_v29 }
 0x2a2   : > { %v3650_v36 = vpop.f32.mrb[6].mxu1  ;;  %3670 = vmatpush3.bf16.msra.mxu1 %v4477_v24 }
 0x2a3   : > { %v4495_v38 = vpack.c.bf16 %v3650_v36, %v3649_v30  ;;  %v1129_v39 = vpop.f32.mrb[7].mxu1  ;;  %3831 = vmatprep.subr.msk.bf16.mxu0 %vm1177_vm0, %v4492_v37  ;;  %v1194_v41 = vsel %vm1177_vm0, %v4492_v37, 0 }
 0x2a4   : > { %v4497_v40 = vpack.c.bf16 %v1129_v39, %v1126_v32  ;;  %3654 = vmatpush3.bf16.xpose.msra.mxu0 %v1194_v41 }
 0x2a5   : > { %v1057_v42 = vpop.f32.mrb[8].mxu0 }
 0x2a6   : > { %3671 = vmatprep.subr.bf16.mxu1 %v4497_v40  ;;  %v1059_v43 = vpop.f32.mrb[9].mxu0 }
 0x2a7   : > { %3672 = vmatpush3.bf16.msra.mxu1 %v4497_v40  ;;  %v1061_v44 = vpop.f32.mrb[10].mxu0 }
 0x2a8   : > { %3673 = vmatprep.subr.bf16.mxu1 %v4495_v38  ;;  %v4506_v45 = vpack.c.bf16 %v1061_v44, %v1057_v42  ;;  %v1063_v46 = vpop.f32.mrb[11].mxu0 }
 0x2a9   : > { %v4508_v47 = vpack.c.bf16 %v1063_v46, %v1059_v43 }
 0x2ab   : > { %3674 = vmatpush3.bf16.msra.mxu1 %v4495_v38  ;;  %3832 = vmatprep.subr.msk.bf16.mxu0 %vm1177_vm0, %v4508_v47  ;;  %v1197_v48 = vsel %vm1177_vm0, %v4508_v47, 0 }
 0x2ac   : > { %3656 = vmatpush3.bf16.xpose.msra.mxu0 %v1197_v48 }
 0x2ad   : > { %v1067_v49 = vpop.f32.mrb[12].mxu0 }
 0x2ae   : > { %v1069_v50 = vpop.f32.mrb[13].mxu0 }
 0x2af   : > { %v1071_v51 = vpop.f32.mrb[14].mxu0 }
 0x2b0   : > { %v4515_v52 = vpack.c.bf16 %v1071_v51, %v1067_v49  ;;  %v1073_v53 = vpop.f32.mrb[15].mxu0 }
 0x2b1   : > { %v4517_v54 = vpack.c.bf16 %v1073_v53, %v1069_v50 }
 0x2b3   : > { %3833 = vmatprep.subr.msk.bf16.mxu0 %vm1177_vm0, %v4517_v54  ;;  %v1200_v55 = vsel %vm1177_vm0, %v4517_v54, 0 }
 0x2b4   : > { %3658 = vmatpush3.bf16.xpose.msra.mxu0 %v1200_v55 }
 0x2bb   : > { %3660 = vmatmul.mubr.msk.bf16.vlgmr.msra.gmra.mrb[16].mxu0 %vm1177_vm0, %v4490_v33 }
 0x2bc   : > { %3663 = vmatprep.mubr.msk.bf16.mxu0 %vm1177_vm0, %v4506_v45 }
 0x2c3   : > { %3664 = vmatmul.mubr.msk.bf16.gmra.mrb[20].mxu0 %vm1177_vm0, %v4515_v52 }
 0x38e   : > { %v3661_v56 = vpop.f32.mrb[16].mxu0 }
 0x38f   : > { %v1236_v57 = vpop.f32.mrb[17].mxu0  ;;  %v1269_v62 = vmul.f32 0.125, %v3661_v56 }
 0x390   : > { %v1267_v2 = vmul.f32 0.125, %v1236_v57  ;;  %v3662_v3 = vpop.f32.mrb[18].mxu0 }
 0x391   : > { %v1239_v4 = vpop.f32.mrb[19].mxu0  ;;  %v1270_v7 = vmul.f32 0.125, %v3662_v3  ;;  %v1277_v15 = vadd.f32 %v1269_v62, %v4542_v6 }
 0x392   : > { %v1268_v10 = vmul.f32 0.125, %v1239_v4  ;;  %v1275_v11 = vadd.f32 %v1267_v2, %v4532_v61 }
 0x393   : > { %v1278_v17 = vadd.f32 %v1270_v7, %v4548_v12  ;;  %v1289_v19 = vsel %vm1177_vm0, %v1277_v15, -inf }
 0x394   : > { %v1283_v13 = vsel %vm1177_vm0, %v1275_v11, -inf  ;;  %v1276_v14 = vadd.f32 %v1268_v10, %v4537_v5 }
 0x395   : > { %1284 = vmax.xlane.f32.xlu0 %v1283_v13  ;;  %v1292_v25 = vsel %vm1177_vm0, %v1278_v17, -inf }
 0x396   : > { %v3665_v59 = vpop.f32.mrb[20].mxu0  ;;  %v1286_v16 = vsel %vm1177_vm0, %v1276_v14, -inf }
 0x397   : > { %1287 = vmax.xlane.f32.xlu1 %v1286_v16  ;;  %v1252_v58 = vpop.f32.mrb[21].mxu0  ;;  %v1273_v63 = vmul.f32 0.125, %v3665_v59 }
 0x398   : > { %v1271_v18 = vmul.f32 0.125, %v1252_v58  ;;  %v3666_v0 = vpop.f32.mrb[22].mxu0 }
 0x399   : > { %1290 = vmax.xlane.f32.xlu0 %v1289_v19  ;;  %v1255_v1 = vpop.f32.mrb[23].mxu0  ;;  %v1274_v8 = vmul.f32 0.125, %v3666_v0  ;;  %v1281_v31 = vadd.f32 %v1273_v63, %v4569_v21 }
 0x39a   : > { %v1272_v23 = vmul.f32 0.125, %v1255_v1  ;;  %v1279_v27 = vadd.f32 %v1271_v18, %v4558_v60 }
 0x39b   : > { %1293 = vmax.xlane.f32.xlu1 %v1292_v25  ;;  %v1282_v35 = vadd.f32 %v1274_v8, %v4576_v28  ;;  %v1301_v36 = vsel %vm1177_vm0, %v1281_v31, -inf }
 0x39c   : > { %v1295_v29 = vsel %vm1177_vm0, %v1279_v27, -inf  ;;  %v4580_v30 = vadd.f32 %v1272_v23, %v4564_v20 }
 0x39d   : > { %1296 = vmax.xlane.f32.xlu0 %v1295_v29  ;;  %v1304_v39 = vsel %vm1177_vm0, %v1282_v35, -inf }
 0x39e   : > { %v1298_v32 = vsel %vm1177_vm0, %v4580_v30, -inf }
 0x39f   : > { %1299 = vmax.xlane.f32.xlu1 %v1298_v32 }
 0x3a1   : > { %1302 = vmax.xlane.f32.xlu0 %v1301_v36 }
 0x3a3   : > { %1305 = vmax.xlane.f32.xlu1 %v1304_v39 }
 0x422   : > { %v1285_v41 = vpop.xlane.xlu0 %1284 }
 0x423   : > { %v1307_v42 = vsub.f32 %v1275_v11, %v1285_v41 }
 0x424   : > { %v1288_v43 = vpop.xlane.xlu1 %1287 }
 0x425   : > { %v1308_v46 = vsub.f32 %v1276_v14, %v1288_v43  ;;  %v1315_v49 = vmul.f32 1.442695, %v1307_v42 }
 0x426   : > { %v1291_v44 = vpop.xlane.xlu0 %1290 }
 0x427   : > { %v1309_v48 = vsub.f32 %v1277_v15, %v1291_v44  ;;  %v1317_v56 = vmul.f32 1.442695, %v1308_v46 }
 0x428   : > { %v1294_v50 = vpop.xlane.xlu1 %1293 }
 0x429   : > { %v1319_v51 = vmul.f32 1.442695, %v1309_v48  ;;  %v1310_v53 = vsub.f32 %v1278_v17, %v1294_v50 }
 0x42a   : > { %v1297_v55 = vpop.xlane.xlu0 %1296 }
 0x42b   : > { %4049 = vpow2.f32 %v1319_v51  ;;  %v1321_v57 = vmul.f32 1.442695, %v1310_v53  ;;  %v1311_v62 = vsub.f32 %v1279_v27, %v1297_v55 }
 0x42c   : > { %4051 = vpow2.f32 %v1315_v49  ;;  %v1300_v19 = vpop.xlane.xlu1 %1299 }
 0x42d   : > { %4053 = vpow2.f32 %v1321_v57  ;;  %v1323_v4 = vmul.f32 1.442695, %v1311_v62  ;;  %v1312_v23 = vsub.f32 %v4580_v30, %v1300_v19 }
 0x42e   : > { %v1303_v2 = vpop.xlane.xlu0 %1302  ;;  %4055 = vpow2.f32 %v1317_v56 }
 0x42f   : > { %v1313_v3 = vsub.f32 %v1281_v31, %v1303_v2  ;;  %v1325_v27 = vmul.f32 1.442695, %v1312_v23 }
 0x430   : > { %v1306_v1 = vpop.xlane.xlu1 %1305 }
 0x431   : > { %v1327_v7 = vmul.f32 1.442695, %v1313_v3  ;;  %v1314_v8 = vsub.f32 %v1282_v35, %v1306_v1 }
 0x433   : > { %4057 = vpow2.f32 %v1327_v7  ;;  %v1329_v25 = vmul.f32 1.442695, %v1314_v8 }
 0x434   : > { %4059 = vpow2.f32 %v1323_v4 }
 0x435   : > { %v4050_v10 = vpop.eup %4049  ;;  %4061 = vpow2.f32 %v1329_v25 }
 0x436   : > { %v4052_v11 = vpop.eup %4051  ;;  %v1337_v13 = vsel %vm1177_vm0, %v4050_v10, 0.0  ;;  %4063 = vpow2.f32 %v1325_v27 }
 0x437   : > { %v4054_v14 = vpop.eup %4053  ;;  %1338 = vadd.xlane.f32.xlu0 %v1337_v13  ;;  %v1331_v16 = vsel %vm1177_vm0, %v4052_v11, 0.0 }
 0x438   : > { %v1340_v15 = vsel %vm1177_vm0, %v4054_v14, 0.0  ;;  %v4056_v59 = vpop.eup %4055 }
 0x439   : > { %1341 = vadd.xlane.f32.xlu1 %v1340_v15  ;;  %v1334_v17 = vsel %vm1177_vm0, %v4056_v59, 0.0 }
 0x43b   : > { %1332 = vadd.xlane.f32.xlu0 %v1331_v16 }
 0x43d   : > { %v4592_v58 = vpop.eup %4057  ;;  %1335 = vadd.xlane.f32.xlu1 %v1334_v17 }
 0x43e   : > { %v1349_v63 = vsel %vm1177_vm0, %v4592_v58, 0.0  ;;  %v4596_v18 = vpop.eup %4059 }
 0x43f   : > { %1350 = vadd.xlane.f32.xlu0 %v1349_v63  ;;  %v1343_v0 = vsel %vm1177_vm0, %v4596_v18, 0.0 }
 0x443   : > { %1344 = vadd.xlane.f32.xlu0 %v1343_v0 }
 0x44e   : > { %1474 = vrot.lane.b32.xlu1 %v4492_v37, %s4199_s21  ;;  %v4062_v37 = vpop.eup %4061 }
 0x44f   : > { %v4064_v29 = vpop.eup %4063 }
 0x452   : > { %1476 = vrot.lane.b32.xlu1 %v4508_v47, %s4199_s21  ;;  %v1352_v47 = vsel %vm1177_vm0, %v4062_v37, 0.0 }
 0x459   : > { %1472 = vrot.lane.b32.xlu0 %v4475_v9, %s4199_s21  ;;  %v1346_v9 = vsel %vm1177_vm0, %v4064_v29, 0.0 }
 0x45d   : > { %1460 = vrot.lane.b32.xlu0 %v4473_v22, %s4199_s21 }
 0x461   : > { %1464 = vrot.lane.b32.xlu0 %v4506_v45, %s4199_s21 }
 0x476   : > { %1353 = vadd.xlane.f32.xlu1 %v1352_v47 }
 0x47a   : > { %1347 = vadd.xlane.f32.xlu1 %v1346_v9 }
 0x48b   : > { %1478 = vrot.lane.b32.xlu1 %v4517_v54, %s4199_s21 }
 0x48f   : > { %1462 = vrot.lane.b32.xlu1 %v4490_v33, %s4199_s21 }
 0x493   : > { %1466 = vrot.lane.b32.xlu1 %v4515_v52, %s4199_s21 }
 0x4c4   : > { %v1339_v22 = vpop.xlane.xlu0 %1338 }
 0x4c6   : > { %v1342_v45 = vpop.xlane.xlu1 %1341 }
 0x4c7   : > { %4065 = vrcp.f32 %v1342_v45 }
 0x4c8   : > { %v1333_v30 = vpop.xlane.xlu0 %1332 }
 0x4c9   : > { %4067 = vrcp.f32 %v1333_v30 }
 0x4ca   : > { %4069 = vrcp.f32 %v1339_v22  ;;  %v1336_v31 = vpop.xlane.xlu1 %1335 }
 0x4cb   : > { %4071 = vrcp.f32 %v1336_v31 }
 0x4cc   : > { %v1351_v32 = vpop.xlane.xlu0 %1350 }
 0x4ce   : > { %v1475_v50 = vpop.permute.xlu1 %1474 }
 0x4cf   : > { %v1496_v51 = vsel %vm1177_vm0, %v1475_v50, 0 }
 0x4d0   : > { %v1345_v35 = vpop.xlane.xlu0 %1344 }
 0x4d1   : > { %v4066_v36 = vpop.eup %4065 }
 0x4d2   : > { %v1366_v43 = vmul.f32 %v4066_v36, %v4054_v14  ;;  %v1477_v53 = vpop.permute.xlu1 %1476 }
 0x4d3   : > { %v4068_v39 = vpop.eup %4067  ;;  %v1499_v55 = vsel %vm1177_vm0, %v1477_v53, 0 }
 0x4d4   : > { %v4070_v41 = vpop.eup %4069  ;;  %v1473_v54 = vpop.permute.xlu0 %1472  ;;  %v1363_v33 = vmul.f32 %v4068_v39, %v4052_v11 }
 0x4d5   : > { %v4072_v42 = vpop.eup %4071  ;;  %3834 = vmatprep.subr.msk.bf16.mxu1 %vm1177_vm0, %v1473_v54  ;;  %v1365_v44 = vmul.f32 %v4070_v41, %v4050_v10  ;;  %v1493_v49 = vsel %vm1177_vm0, %v1473_v54, 0 }
 0x4d6   : > { %v1364_v52 = vmul.f32 %v4072_v42, %v4056_v59 }
 0x4d7   : > { %v1372_v48 = vpack.c.bf16 %v1366_v43, %v1365_v44 }
 0x4d8   : > { %v1371_v46 = vpack.c.bf16 %v1364_v52, %v1363_v33  ;;  %v1461_v17 = vpop.permute.xlu0 %1460 }
 0x4da   : > { %3675 = vmatprep.mubr.msk.bf16.mxu1 %vm1177_vm0, %v1371_v46 }
 0x4db   : > { %3676 = vmatmul.mubr.msk.bf16.vlgmr.msra.gmra.mrb[8].mxu1 %vm1177_vm0, %v1372_v48 }
 0x4dc   : > { %3684 = vmatpush3.bf16.xpose.msra.mxu1 %v1493_v49  ;;  %v1465_v0 = vpop.permute.xlu0 %1464 }
 0x4dd   : > { %3835 = vmatprep.subr.msk.bf16.mxu1 %vm1177_vm0, %v1475_v50 }
 0x4e4   : > { %3686 = vmatpush3.bf16.xpose.msra.mxu1 %v1496_v51 }
 0x4e5   : > { %3836 = vmatprep.subr.msk.bf16.mxu1 %vm1177_vm0, %v1477_v53 }
 0x4ec   : > { %3688 = vmatpush3.bf16.xpose.msra.mxu1 %v1499_v55 }
 0x503   : > { %v1354_v56 = vpop.xlane.xlu1 %1353 }
 0x504   : > { %4073 = vrcp.f32 %v1354_v56 }
 0x505   : > { %4075 = vrcp.f32 %v1345_v35 }
 0x506   : > { %4077 = vrcp.f32 %v1351_v32 }
 0x507   : > { %v1348_v57 = vpop.xlane.xlu1 %1347 }
 0x508   : > { %4079 = vrcp.f32 %v1348_v57 }
 0x50b   : > { %v1479_v62 = vpop.permute.xlu1 %1478 }
 0x50c   : > { %v1502_v2 = vsel %vm1177_vm0, %v1479_v62, 0  ;;  %3837 = vmatprep.subr.msk.bf16.mxu1 %vm1177_vm0, %v1479_v62 }
 0x50d   : > { %3690 = vmatpush3.bf16.xpose.msra.mxu1 %v1502_v2 }
 0x50e   : > { %v4074_v3 = vpop.eup %4073 }
 0x50f   : > { %v4076_v4 = vpop.eup %4075  ;;  %v1370_v11 = vmul.f32 %v4074_v3, %v4062_v37  ;;  %v1463_v63 = vpop.permute.xlu1 %1462 }
 0x510   : > { %v4078_v7 = vpop.eup %4077  ;;  %v1367_v13 = vmul.f32 %v4076_v4, %v4596_v18 }
 0x511   : > { %v1369_v15 = vmul.f32 %v4078_v7, %v4592_v58 }
 0x512   : > { %v4080_v10 = vpop.eup %4079 }
 0x513   : > { %v1368_v14 = vmul.f32 %v4080_v10, %v4064_v29  ;;  %v1374_v16 = vpack.c.bf16 %v1370_v11, %v1369_v15  ;;  %v1467_v19 = vpop.permute.xlu1 %1466 }
 0x515   : > { %v1373_v59 = vpack.c.bf16 %v1368_v14, %v1367_v13 }
 0x517   : > { %3679 = vmatprep.mubr.msk.bf16.mxu1 %vm1177_vm0, %v1373_v59 }
 0x518   : > { %3680 = vmatmul.mubr.msk.bf16.gmra.mrb[12].mxu1 %vm1177_vm0, %v1374_v16 }
 0x519   : > { %3691 = vmatprep.mubr.msk.bf16.mxu1 %vm1177_vm0, %v1461_v17 }
 0x520   : > { %3692 = vmatmul.mubr.msk.bf16.vlgmr.msra.gmra.mrb[16].mxu1 %vm1177_vm0, %v1463_v63 }
 0x521   : > { %3695 = vmatprep.mubr.msk.bf16.mxu1 %vm1177_vm0, %v1465_v0 }
 0x528   : > { %3696 = vmatmul.mubr.msk.bf16.gmra.mrb[20].mxu1 %vm1177_vm0, %v1467_v19 }
 0x5ae   : > { %v4637_v18 = vpop.f32.mrb[8].mxu1 }
 0x5af   : > { %v4639_v58 = vpop.f32.mrb[9].mxu1 }
 0x5b0   : > { %v4641_v1 = vpop.f32.mrb[10].mxu1 }
 0x5b1   : > { %v1453_v8 = vpack.c.bf16 %v4641_v1, %v4637_v18  ;;  %v4645_v23 = vpop.f32.mrb[11].mxu1  ;;  %v3956_v18 = vld [vmem:[%s4320_s24 + $0x8] ss:$16 sps:$4 sm:$0xff]   ;;  %v3958_v1 = vld [vmem:[%s4320_s24 + $0xc] ss:$16 sps:$4 sm:$0xff]  }
 0x5b2   : > { %v1452_v25 = vpack.c.bf16 %v4645_v23, %v4639_v58  ;;  %v3953_v58 = vld [vmem:[%s4320_s24] ss:$16 sps:$4 sm:$0xff]   ;;  %v3955_v23 = vld [vmem:[%s4320_s24 + $0x4] ss:$16 sps:$4 sm:$0xff]  }
 0x5eb   : > { %v4649_v27 = vpop.f32.mrb[12].mxu1 }
 0x5ec   : > { %v4651_v37 = vpop.f32.mrb[13].mxu1 }
 0x5ed   : > { %v4653_v47 = vpop.f32.mrb[14].mxu1 }
 0x5ee   : > { %v1455_v29 = vpack.c.bf16 %v4653_v47, %v4649_v27  ;;  %v4657_v9 = vpop.f32.mrb[15].mxu1  ;;  %v3962_v27 = vld [vmem:[%s4320_s24 + $0x28] ss:$16 sps:$4 sm:$0xff]   ;;  %v3967_v47 = vld [vmem:[%s4320_s24 + $0x44] ss:$16 sps:$4 sm:$0xff]  }
 0x5ef   : > { %v1454_v22 = vpack.c.bf16 %v4657_v9, %v4651_v37  ;;  %v3959_v37 = vld [vmem:[%s4320_s24 + $0x20] ss:$16 sps:$4 sm:$0xff]  }
 0x5f0   : > { %v3965_v9 = vld [vmem:[%s4320_s24 + $0x40] ss:$16 sps:$4 sm:$0xff]  }
 0x5f3   : > { %v3693_v45 = vpop.f32.mrb[16].mxu1 }
 0x5f4   : > { %v1538_v30 = vpop.f32.mrb[17].mxu1  ;;  %v1571_v31 = vmul.f32 0.125, %v3693_v45 }
 0x5f5   : > { %v1569_v32 = vmul.f32 0.125, %v1538_v30  ;;  %v3694_v35 = vpop.f32.mrb[18].mxu1 }
 0x5f6   : > { %v1541_v36 = vpop.f32.mrb[19].mxu1  ;;  %v1572_v54 = vmul.f32 0.125, %v3694_v35  ;;  %v1579_v33 = vadd.f32 %v1571_v31, %v4542_v6 }
 0x5f7   : > { %v1570_v39 = vmul.f32 0.125, %v1541_v36  ;;  %v1577_v41 = vadd.f32 %v1569_v32, %v4532_v61 }
 0x5f8   : > { %v1591_v50 = vsel %vm1177_vm0, %v1579_v33, -inf  ;;  %v1580_v51 = vadd.f32 %v1572_v54, %v4548_v12 }
 0x5f9   : > { %v1585_v42 = vsel %vm1177_vm0, %v1577_v41, -inf  ;;  %v1578_v43 = vadd.f32 %v1570_v39, %v4537_v5 }
 0x5fa   : > { %1586 = vmax.xlane.f32.xlu0 %v1585_v42  ;;  %v1594_v5 = vsel %vm1177_vm0, %v1580_v51, -inf }
 0x5fb   : > { %v3697_v52 = vpop.f32.mrb[20].mxu1  ;;  %v1588_v44 = vsel %vm1177_vm0, %v1578_v43, -inf }
 0x5fc   : > { %1589 = vmax.xlane.f32.xlu1 %v1588_v44  ;;  %v1554_v46 = vpop.f32.mrb[21].mxu1  ;;  %v1575_v56 = vmul.f32 0.125, %v3697_v52 }
 0x5fd   : > { %v1573_v48 = vmul.f32 0.125, %v1554_v46  ;;  %v3698_v49 = vpop.f32.mrb[22].mxu1 }
 0x5fe   : > { %1592 = vmax.xlane.f32.xlu0 %v1591_v50  ;;  %v1557_v61 = vpop.f32.mrb[23].mxu1  ;;  %v1576_v53 = vmul.f32 0.125, %v3698_v49  ;;  %v1583_v3 = vadd.f32 %v1575_v56, %v4569_v21 }
 0x5ff   : > { %v1574_v55 = vmul.f32 0.125, %v1557_v61  ;;  %v1581_v57 = vadd.f32 %v1573_v48, %v4558_v60 }
 0x600   : > { %v1584_v2 = vadd.f32 %v1576_v53, %v4576_v28 }
 0x601   : > { %v4670_v6 = vadd.f32 %v1574_v55, %v4564_v20  ;;  %v1597_v12 = vsel %vm1177_vm0, %v1581_v57, -inf  ;;  %v1603_v20 = vsel %vm1177_vm0, %v1583_v3, -inf }
 0x602   : > { %1595 = vmax.xlane.f32.xlu0 %v1594_v5  ;;  %v1606_v4 = vsel %vm1177_vm0, %v1584_v2, -inf  ;;  %v3946_v5 = vld [vmem:[%s4305_s12 + $0x28] sm:$0xff]  }
 0x603   : > { %v1600_v62 = vsel %vm1177_vm0, %v4670_v6, -inf }
 0x604   : > { %1601 = vmax.xlane.f32.xlu1 %v1600_v62 }
 0x606   : > { %1598 = vmax.xlane.f32.xlu0 %v1597_v12 }
 0x608   : > { %1607 = vmax.xlane.f32.xlu1 %v1606_v4 }
 0x60a   : > { %1604 = vmax.xlane.f32.xlu0 %v1603_v20 }
 0x687   : > { %v1587_v7 = vpop.xlane.xlu0 %1586 }
 0x688   : > { %v1609_v60 = vsub.f32 %v1577_v41, %v1587_v7 }
 0x689   : > { %v1590_v10 = vpop.xlane.xlu1 %1589 }
 0x68a   : > { %v1617_v14 = vmul.f32 1.442695, %v1609_v60  ;;  %v1610_v15 = vsub.f32 %v1578_v43, %v1590_v10 }
 0x68b   : > { %v1593_v11 = vpop.xlane.xlu0 %1592 }
 0x68c   : > { %v1611_v13 = vsub.f32 %v1579_v33, %v1593_v11  ;;  %v1619_v21 = vmul.f32 1.442695, %v1610_v15 }
 0x68e   : > { %v1621_v28 = vmul.f32 1.442695, %v1611_v13 }
 0x68f   : > { %v1596_v59 = vpop.xlane.xlu0 %1595 }
 0x690   : > { %4081 = vpow2.f32 %v1621_v28  ;;  %v1612_v16 = vsub.f32 %v1580_v51, %v1596_v59 }
 0x691   : > { %4083 = vpow2.f32 %v1617_v14  ;;  %v1602_v48 = vpop.xlane.xlu1 %1601 }
 0x692   : > { %v1623_v17 = vmul.f32 1.442695, %v1612_v16  ;;  %v1614_v51 = vsub.f32 %v4670_v6, %v1602_v48  ;;  %v3947_v6 = vld [vmem:[%s4305_s12 + $0x30] sm:$0xff]  }
 0x693   : > { %v1599_v63 = vpop.xlane.xlu0 %1598 }
 0x694   : > { %4085 = vpow2.f32 %v1623_v17  ;;  %v1613_v0 = vsub.f32 %v1581_v57, %v1599_v63  ;;  %v1627_v53 = vmul.f32 1.442695, %v1614_v51 }
 0x695   : > { %4087 = vpow2.f32 %v1619_v21  ;;  %v1608_v49 = vpop.xlane.xlu1 %1607 }
 0x696   : > { %v1625_v31 = vmul.f32 1.442695, %v1613_v0  ;;  %v1616_v50 = vsub.f32 %v1584_v2, %v1608_v49 }
 0x697   : > { %v1605_v19 = vpop.xlane.xlu0 %1604 }
 0x698   : > { %v1615_v45 = vsub.f32 %v1583_v3, %v1605_v19  ;;  %v1631_v61 = vmul.f32 1.442695, %v1616_v50  ;;  %v3950_v50 = vld [vmem:[%s4305_s12 + $0x8] sm:$0xff]  }
 0x69a   : > { %v4680_v30 = vpop.eup %4081  ;;  %v1629_v32 = vmul.f32 1.442695, %v1615_v45 }
 0x69b   : > { %v1639_v35 = vsel %vm1177_vm0, %v4680_v30, 0.0  ;;  %v4084_v36 = vpop.eup %4083 }
 0x69c   : > { %4089 = vpow2.f32 %v1629_v32  ;;  %1640 = vadd.xlane.f32.xlu0 %v1639_v35  ;;  %v1633_v41 = vsel %vm1177_vm0, %v4084_v36, 0.0 }
 0x69d   : > { %4091 = vpow2.f32 %v1625_v31 }
 0x69e   : > { %v4684_v39 = vpop.eup %4085  ;;  %4093 = vpow2.f32 %v1631_v61 }
 0x69f   : > { %v1642_v54 = vsel %vm1177_vm0, %v4684_v39, 0.0  ;;  %v4088_v42 = vpop.eup %4087  ;;  %4095 = vpow2.f32 %v1627_v53  ;;  %v3951_v53 = vld [vmem:[%s4305_s12 + $0x10] sm:$0xff]  }
 0x6a0   : > { %1634 = vadd.xlane.f32.xlu0 %v1633_v41  ;;  %1643 = vadd.xlane.f32.xlu1 %v1642_v54  ;;  %v1636_v43 = vsel %vm1177_vm0, %v4088_v42, 0.0 }
 0x6a4   : > { %1637 = vadd.xlane.f32.xlu1 %v1636_v43  ;;  %v3949_v43 = vld [vmem:[%s4305_s12] sm:$0xff]  }
 0x6a6   : > { %v4690_v33 = vpop.eup %4089 }
 0x6a7   : > { %v1651_v52 = vsel %vm1177_vm0, %v4690_v33, 0.0  ;;  %v4694_v44 = vpop.eup %4091 }
 0x6a8   : > { %1652 = vadd.xlane.f32.xlu0 %v1651_v52  ;;  %v1645_v46 = vsel %vm1177_vm0, %v4694_v44, 0.0  ;;  %v4094_v55 = vpop.eup %4093 }
 0x6a9   : > { %v4096_v56 = vpop.eup %4095 }
 0x6ac   : > { %1646 = vadd.xlane.f32.xlu0 %v1645_v46 }
 0x6b5   : > { %1683 = vrot.lane.b32.xlu1 %v4477_v24, %s4199_s21  ;;  %v1654_v24 = vsel %vm1177_vm0, %v4094_v55, 0.0 }
 0x6b9   : > { %1685 = vrot.lane.b32.xlu1 %v4497_v40, %s4199_s21  ;;  %v1648_v40 = vsel %vm1177_vm0, %v4096_v56, 0.0 }
 0x6c2   : > { %1681 = vrot.lane.b32.xlu0 %v4479_v26, %s4199_s21  ;;  %v3945_v26 = vld [vmem:[%s4305_s12 + $0x20] sm:$0xff]  }
 0x6c3   : > { %3715 = vmatprep.subr.bf16.mxu0 %v3945_v26 }
 0x6c4   : > { %3716 = vmatpush3.bf16.msra.mxu0 %v3945_v26  ;;  %v3952_v26 = vld [vmem:[%s4305_s12 + $0x18] sm:$0xff]  }
 0x6c5   : > { %3717 = vmatprep.subr.bf16.mxu0 %v3946_v5 }
 0x6c8   : > { %3718 = vmatpush3.bf16.msra.mxu0 %v3946_v5 }
 0x6c9   : > { %3719 = vmatprep.subr.bf16.mxu0 %v3947_v6 }
 0x6cc   : > { %3720 = vmatpush3.bf16.msra.mxu0 %v3947_v6 }
 0x6dd   : > { %1655 = vadd.xlane.f32.xlu1 %v1654_v24 }
 0x6e1   : > { %1649 = vadd.xlane.f32.xlu1 %v1648_v40 }
 0x6f2   : > { %1687 = vrot.lane.b32.xlu1 %v4495_v38, %s4199_s21 }
 0x729   : > { %v1641_v57 = vpop.xlane.xlu0 %1640 }
 0x72d   : > { %v1635_v62 = vpop.xlane.xlu0 %1634  ;;  %v1644_v2 = vpop.xlane.xlu1 %1643 }
 0x72e   : > { %4097 = vrcp.f32 %v1635_v62 }
 0x731   : > { %v1638_v12 = vpop.xlane.xlu1 %1637 }
 0x732   : > { %4099 = vrcp.f32 %v1638_v12 }
 0x733   : > { %4101 = vrcp.f32 %v1644_v2 }
 0x734   : > { %4103 = vrcp.f32 %v1641_v57  ;;  %v4129_v57 = vld [vmem:[#allocation2] sm:$0xff] }
 0x735   : > { %v1653_v3 = vpop.xlane.xlu0 %1652  ;;  %v1684_v38 = vpop.permute.xlu1 %1683 }
 0x738   : > { %v4098_v20 = vpop.eup %4097 }
 0x739   : > { %v1647_v4 = vpop.xlane.xlu0 %1646  ;;  %v1665_v10 = vmul.f32 %v4098_v20, %v4084_v36  ;;  %v1686_v14 = vpop.permute.xlu1 %1685  ;;  %v4131_v20 = vld [vmem:[#allocation2 + $0x8] sm:$0xff] }
 0x73c   : > { %v4100_v7 = vpop.eup %4099 }
 0x73d   : > { %v1682_v60 = vpop.permute.xlu0 %1681  ;;  %v1666_v11 = vmul.f32 %v4100_v7, %v4088_v42  ;;  %v4102_v28 = vpop.eup %4101  ;;  %v3948_v42 = vld [vmem:[%s4305_s12 + $0x38] sm:$0xff]  }
 0x73e   : > { %3699 = vmatprep.subr.bf16.mxu1 %v1682_v60  ;;  %v4104_v16 = vpop.eup %4103  ;;  %v1668_v21 = vmul.f32 %v4102_v28, %v4684_v39  ;;  %3721 = vmatprep.subr.bf16.mxu0 %v3948_v42 }
 0x73f   : > { %3700 = vmatpush3.bf16.msra.mxu1 %v1682_v60  ;;  %v1673_v13 = vpack.c.bf16 %v1666_v11, %v1665_v10  ;;  %v1667_v63 = vmul.f32 %v4104_v16, %v4680_v30  ;;  %3722 = vmatpush3.bf16.msra.mxu0 %v3948_v42  ;;  %v4132_v10 = vld [vmem:[#allocation2 + $0x18] sm:$0xff]  ;;  %v4133_v16 = vld [vmem:[#allocation2 + $0x20] sm:$0xff] }
 0x740   : > { %3701 = vmatprep.subr.bf16.mxu1 %v1684_v38  ;;  %3731 = vmatprep.subr.bf16.mxu0 %v3949_v43  ;;  %v3971_v42 = vld [vmem:[%s4320_s24 + $0x60] ss:$16 sps:$4 sm:$0xff]  }
 0x741   : > { %3707 = vmatprep.mubr.msk.bf16.mxu1 %vm1177_vm0, %v1673_v13  ;;  %v1674_v0 = vpack.c.bf16 %v1668_v21, %v1667_v63 }
 0x743   : > { %3702 = vmatpush3.bf16.msra.mxu1 %v1684_v38 }
 0x744   : > { %3703 = vmatprep.subr.bf16.mxu1 %v1686_v14 }
 0x747   : > { %3704 = vmatpush3.bf16.msra.mxu1 %v1686_v14 }
 0x76a   : > { %v1656_v15 = vpop.xlane.xlu1 %1655 }
 0x76b   : > { %4105 = vrcp.f32 %v1656_v15 }
 0x76c   : > { %4107 = vrcp.f32 %v1647_v4 }
 0x76d   : > { %4109 = vrcp.f32 %v1653_v3  ;;  %v4130_v3 = vld [vmem:[#allocation2 + $0x10] sm:$0xff] }
 0x76e   : > { %v1650_v59 = vpop.xlane.xlu1 %1649 }
 0x76f   : > { %4111 = vrcp.f32 %v1650_v59 }
 0x772   : > { %v1688_v17 = vpop.permute.xlu1 %1687 }
 0x773   : > { %3705 = vmatprep.subr.bf16.mxu1 %v1688_v17 }
 0x774   : > { %3706 = vmatpush3.bf16.msra.mxu1 %v1688_v17  ;;  %v4134_v17 = vld [vmem:[#allocation2 + $0x28] sm:$0xff] }
 0x775   : > { %v4106_v19 = vpop.eup %4105  ;;  %2236 = vmatprep.subr.bf16.mxu1 %v3955_v23  ;;  %v4001_v23 = vld [vmem:[%s4325_s27 + $0x40] sm:$0xff]  }
 0x776   : > { %v4108_v45 = vpop.eup %4107  ;;  %v1672_v35 = vmul.f32 %v4106_v19, %v4094_v55  ;;  %v4135_v19 = vld [vmem:[#allocation2 + $0x38] sm:$0xff] }
 0x777   : > { %3708 = vmatmul.mubr.msk.bf16.vlgmr.msra.gmra.mrb[24].mxu1 %vm1177_vm0, %v1674_v0  ;;  %v4110_v31 = vpop.eup %4109  ;;  %v1669_v36 = vmul.f32 %v4108_v45, %v4694_v44 }
 0x778   : > { %v1671_v39 = vmul.f32 %v4110_v31, %v4690_v33  ;;  %2237 = vmatpush1.bf16.msra.mxu1 %v3953_v58  ;;  %v3998_v58 = vld [vmem:[%s4320_s24 + $0xe8] ss:$16 sps:$4 sm:$0xff]  }
 0x779   : > { %v4112_v32 = vpop.eup %4111 }
 0x77a   : > { %v1670_v41 = vmul.f32 %v4112_v32, %v4096_v56  ;;  %v1676_v30 = vpack.c.bf16 %v1672_v35, %v1671_v39  ;;  %v4136_v32 = vld [vmem:[#allocation2 + $0x30] sm:$0xff] }
 0x77c   : > { %v1675_v54 = vpack.c.bf16 %v1670_v41, %v1669_v36 }
 0x77e   : > { %3711 = vmatprep.mubr.msk.bf16.mxu1 %vm1177_vm0, %v1675_v54  ;;  %v3973_v54 = vld [vmem:[%s4320_s24 + $0x64] ss:$16 sps:$4 sm:$0xff]  }
 0x77f   : > { %3712 = vmatmul.mubr.msk.bf16.gmra.mrb[28].mxu1 %vm1177_vm0, %v1676_v30  ;;  %v3976_v30 = vld [vmem:[%s4320_s24 + $0x6c] ss:$16 sps:$4 sm:$0xff]  }
 0x780   : > { %2268 = vmatprep.mubr.bf16.mxu1 %v4198_v34 }
 0x84a   : > { %v3709_v52 = vpop.f32.mrb[24].mxu1 }
 0x84b   : > { %v1739_v44 = vpop.f32.mrb[25].mxu1 }
 0x84c   : > { %v3710_v46 = vpop.f32.mrb[26].mxu1 }
 0x84d   : > { %v1771_v48 = vpack.c.bf16 %v3710_v46, %v3709_v52  ;;  %v1742_v33 = vpop.f32.mrb[27].mxu1  ;;  %v3979_v52 = vld [vmem:[%s4320_s24 + $0x84] ss:$16 sps:$4 sm:$0xff]   ;;  %v3977_v46 = vld [vmem:[%s4320_s24 + $0x80] ss:$16 sps:$4 sm:$0xff]  }
 0x84e   : > { %v1770_v49 = vpack.c.bf16 %v1742_v33, %v1739_v44  ;;  %v3982_v44 = vld [vmem:[%s4320_s24 + $0x8c] ss:$16 sps:$4 sm:$0xff]   ;;  %v3985_v33 = vld [vmem:[%s4320_s24 + $0xa4] ss:$16 sps:$4 sm:$0xff]  }
 0x850   : > { %3723 = vmatprep.mubr.msk.bf16.mxu0 %vm1177_vm0, %v1770_v49  ;;  %v3988_v49 = vld [vmem:[%s4320_s24 + $0xac] ss:$16 sps:$4 sm:$0xff]  }
 0x851   : > { %3724 = vmatmul.mubr.msk.bf16.vlgmr.msra.gmra.mrb[24].mxu0 %vm1177_vm0, %v1771_v48  ;;  %v3980_v48 = vld [vmem:[%s4320_s24 + $0x88] ss:$16 sps:$4 sm:$0xff]  }
 0x852   : > { %v3713_v51 = vpop.f32.mrb[28].mxu1  ;;  %3732 = vmatpush3.bf16.msra.mxu0 %v3949_v43  ;;  %v3974_v43 = vld [vmem:[%s4320_s24 + $0x68] ss:$16 sps:$4 sm:$0xff]  }
 0x853   : > { %v1755_v61 = vpop.f32.mrb[29].mxu1  ;;  %3733 = vmatprep.subr.bf16.mxu0 %v3950_v50 }
 0x854   : > { %v3714_v55 = vpop.f32.mrb[30].mxu1 }
 0x855   : > { %v1773_v24 = vpack.c.bf16 %v3714_v55, %v3713_v51  ;;  %v1758_v56 = vpop.f32.mrb[31].mxu1  ;;  %v3986_v51 = vld [vmem:[%s4320_s24 + $0xa8] ss:$16 sps:$4 sm:$0xff]   ;;  %v3989_v55 = vld [vmem:[%s4320_s24 + $0xc0] ss:$16 sps:$4 sm:$0xff]  }
 0x856   : > { %v1772_v40 = vpack.c.bf16 %v1758_v56, %v1755_v61  ;;  %3734 = vmatpush3.bf16.msra.mxu0 %v3950_v50  ;;  %v3983_v50 = vld [vmem:[%s4320_s24 + $0xa0] ss:$16 sps:$4 sm:$0xff]   ;;  %v3991_v61 = vld [vmem:[%s4320_s24 + $0xc4] ss:$16 sps:$4 sm:$0xff]  }
 0x857   : > { %3735 = vmatprep.subr.bf16.mxu0 %v3951_v53  ;;  %v3997_v56 = vld [vmem:[%s4320_s24 + $0xe4] ss:$16 sps:$4 sm:$0xff]  }
 0x858   : > { %3727 = vmatprep.mubr.msk.bf16.mxu0 %vm1177_vm0, %v1772_v40  ;;  %v4000_v40 = vld [vmem:[%s4320_s24 + $0xec] ss:$16 sps:$4 sm:$0xff]  }
 0x859   : > { %3728 = vmatmul.mubr.msk.bf16.gmra.mrb[28].mxu0 %vm1177_vm0, %v1773_v24  ;;  %v3992_v24 = vld [vmem:[%s4320_s24 + $0xc8] ss:$16 sps:$4 sm:$0xff]  }
 0x85a   : > { %3736 = vmatpush3.bf16.msra.mxu0 %v3951_v53  ;;  %3739 = vmatprep.mubr.msk.bf16.mxu0 %vm1177_vm0, %v1452_v25  ;;  %v3964_v25 = vld [vmem:[%s4320_s24 + $0x2c] ss:$16 sps:$4 sm:$0xff]  }
 0x85b   : > { %3737 = vmatprep.subr.bf16.mxu0 %v3952_v26  ;;  %v3994_v53 = vld [vmem:[%s4320_s24 + $0xcc] ss:$16 sps:$4 sm:$0xff]  }
 0x85e   : > { %3738 = vmatpush3.bf16.msra.mxu0 %v3952_v26  ;;  %v3995_v26 = vld [vmem:[%s4320_s24 + $0xe0] ss:$16 sps:$4 sm:$0xff]  }
 0x85f   : > { %2309 = vmatprep.subr.bf16.mxu0 %v3958_v1 }
 0x861   : > { %3740 = vmatmul.mubr.msk.bf16.vlgmr.msra.gmra.mrb[24].mxu0 %vm1177_vm0, %v1453_v8  ;;  %v3961_v8 = vld [vmem:[%s4320_s24 + $0x24] ss:$16 sps:$4 sm:$0xff]  }
 0x862   : > { %3743 = vmatprep.mubr.msk.bf16.mxu0 %vm1177_vm0, %v1454_v22  ;;  %2310 = vmatpush1.bf16.msra.mxu0 %v3956_v18  ;;  %v3968_v22 = vld [vmem:[%s4320_s24 + $0x48] ss:$16 sps:$4 sm:$0xff]   ;;  %v4002_v18 = vld [vmem:[%s4325_s27 + $0xc0] sm:$0xff]  }
 0x863   : > { %2238 = vmatprep.subr.bf16.mxu1 %v3961_v8  ;;  %2311 = vmatprep.subr.bf16.mxu0 %v3964_v25 }
 0x864   : > { %2239 = vmatpush1.bf16.msra.mxu1 %v3959_v37 }
 0x865   : > { %2240 = vmatprep.subr.bf16.mxu1 %v3967_v47 }
 0x866   : > { %2312 = vmatpush1.bf16.msra.mxu0 %v3962_v27 }
 0x868   : > { %2241 = vmatpush1.bf16.msra.mxu1 %v3965_v9 }
 0x869   : > { %3744 = vmatmul.mubr.msk.bf16.gmra.mrb[28].mxu0 %vm1177_vm0, %v1455_v29  ;;  %v3970_v29 = vld [vmem:[%s4320_s24 + $0x4c] ss:$16 sps:$4 sm:$0xff]   ;;  %2242 = vmatprep.subr.bf16.mxu1 %v3973_v54  ;;  %s5021_s24 = sld [smem:[#allocation8_spill]] (!%p3421_p9) }
 0x86a   : > { %2341 = vmatprep.mubr.bf16.mxu0 %v4198_v34  ;;  %2313 = vmatprep.subr.bf16.mxu0 %v3970_v29 }
 0x86b   : > { %2314 = vmatpush1.bf16.msra.mxu0 %v3968_v22 }
 0x86c   : > { %2315 = vmatprep.subr.bf16.mxu0 %v3976_v30  ;;  %2243 = vmatpush1.bf16.msra.mxu1 %v3971_v42  ;;  %v4007_v42 = vld [vmem:[%s4325_s27 + $0x8] sm:$0xff]  }
 0x86d   : > { %2244 = vmatprep.subr.bf16.mxu1 %v3979_v52 }
 0x86f   : > { %2316 = vmatpush1.bf16.msra.mxu0 %v3974_v43  ;;  %v4008_v43 = vld [vmem:[%s4325_s27 + $0x88] sm:$0xff]  }
 0x870   : > { %2317 = vmatprep.subr.bf16.mxu0 %v3982_v44  ;;  %2245 = vmatpush1.bf16.msra.mxu1 %v3977_v46  ;;  %v4009_v44 = vld [vmem:[%s4325_s27 + $0x50] sm:$0xff]  }
 0x871   : > { %2246 = vmatprep.subr.bf16.mxu1 %v3985_v33  ;;  %v4010_v46 = vld [vmem:[%s4325_s27 + $0xd0] sm:$0xff]  }
 0x873   : > { %2318 = vmatpush1.bf16.msra.mxu0 %v3980_v48 }
 0x874   : > { %2319 = vmatprep.subr.bf16.mxu0 %v3988_v49  ;;  %2247 = vmatpush1.bf16.msra.mxu1 %v3983_v50  ;;  %v4011_v49 = vld [vmem:[%s4325_s27 + $0x10] sm:$0xff]  }
 0x875   : > { %2248 = vmatprep.subr.bf16.mxu1 %v3991_v61  ;;  %v4012_v50 = vld [vmem:[%s4325_s27 + $0x90] sm:$0xff]   ;;  %v4013_v61 = vld [vmem:[%s4325_s27 + $0x58] sm:$0xff]  }
 0x877   : > { %2320 = vmatpush1.bf16.msra.mxu0 %v3986_v51 }
 0x878   : > { %2321 = vmatprep.subr.bf16.mxu0 %v3994_v53  ;;  %2249 = vmatpush1.bf16.msra.mxu1 %v3989_v55  ;;  %v4014_v53 = vld [vmem:[%s4325_s27 + $0xd8] sm:$0xff]  }
 0x879   : > { %2250 = vmatprep.subr.bf16.mxu1 %v3997_v56  ;;  %v4015_v56 = vld [vmem:[%s4325_s27 + $0x18] sm:$0xff]  }
 0x87b   : > { %2322 = vmatpush1.bf16.msra.mxu0 %v3992_v24 }
 0x87c   : > { %2323 = vmatprep.subr.bf16.mxu0 %v4000_v40  ;;  %2251 = vmatpush1.bf16.msra.mxu1 %v3995_v26  ;;  %v4016_v40 = vld [vmem:[%s4325_s27 + $0x98] sm:$0xff]   ;;  %v4017_v26 = vld [vmem:[%s4325_s27 + $0x60] sm:$0xff]  }
 0x87d   : > { %3530 = vmatprep.subr.bf16.mxu1 %v4001_v23 }
 0x87f   : > { %2324 = vmatpush1.bf16.msra.mxu0 %v3998_v58  ;;  %v4018_v58 = vld [vmem:[%s4325_s27 + $0xe0] sm:$0xff]  }
 0x880   : > { %3570 = vmatprep.subr.bf16.mxu0 %v4002_v18 }
 0x934   : > { %v3741_v5 = vpop.f32.mrb[24].mxu0 }
 0x935   : > { %v1945_v6 = vpop.f32.mrb[25].mxu0  ;;  %v4761_v4 = vadd.f32 %v4130_v3, %v3741_v5 }
 0x936   : > { %v4759_v62 = vadd.f32 %v4129_v57, %v1945_v6  ;;  %v3742_v2 = vpop.f32.mrb[26].mxu0 }
 0x937   : > { %v1948_v12 = vpop.f32.mrb[27].mxu0  ;;  %v4769_v11 = vadd.f32 %v4132_v10, %v3742_v2  ;;  %v1986_v14 = vmul.f32 %v4761_v4, %v4761_v4 }
 0x938   : > { %v4763_v7 = vadd.f32 %v4131_v20, %v1948_v12  ;;  %v1984_v38 = vmul.f32 %v4759_v62, %v4759_v62 }
 0x939   : > { %v1987_v0 = vmul.f32 %v4769_v11, %v4769_v11 }
 0x93a   : > { %1992 = vadd.xlane.f32.xlu0 %v1984_v38  ;;  %v1985_v60 = vmul.f32 %v4763_v7, %v4763_v7 }
 0x93c   : > { %1994 = vadd.xlane.f32.xlu1 %v1985_v60  ;;  %v3745_v13 = vpop.f32.mrb[28].mxu0 }
 0x93d   : > { %v1961_v15 = vpop.f32.mrb[29].mxu0  ;;  %v4783_v35 = vadd.f32 %v4136_v32, %v3745_v13  ;;  %v4005_v32 = vld [vmem:[%s4325_s27 + $0x48] sm:$0xff]  }
 0x93e   : > { %1996 = vadd.xlane.f32.xlu0 %v1986_v14  ;;  %v3746_v28 = vpop.f32.mrb[30].mxu0  ;;  %v4773_v21 = vadd.f32 %v4133_v16, %v1961_v15 }
 0x93f   : > { %v1964_v59 = vpop.f32.mrb[31].mxu0  ;;  %v4779_v45 = vadd.f32 %v4135_v19, %v3746_v28  ;;  %v1990_v39 = vmul.f32 %v4783_v35, %v4783_v35  ;;  %v4004_v19 = vld [vmem:[%s4325_s27 + $0x80] sm:$0xff]  }
 0x940   : > { %v4775_v63 = vadd.f32 %v4134_v17, %v1964_v59  ;;  %v1988_v36 = vmul.f32 %v4773_v21, %v4773_v21 }
 0x941   : > { %v1991_v41 = vmul.f32 %v4779_v45, %v4779_v45 }
 0x942   : > { %1998 = vadd.xlane.f32.xlu0 %v1987_v0  ;;  %v1989_v31 = vmul.f32 %v4775_v63, %v4775_v63  ;;  %v4003_v0 = vld [vmem:[%s4325_s27] sm:$0xff]  }
 0x944   : > { %2002 = vadd.xlane.f32.xlu1 %v1989_v31 }
 0x946   : > { %2000 = vadd.xlane.f32.xlu0 %v1988_v36  ;;  %v4006_v36 = vld [vmem:[%s4325_s27 + $0xc8] sm:$0xff]  }
 0x948   : > { %2006 = vadd.xlane.f32.xlu1 %v1991_v41 }
 0x94a   : > { %2004 = vadd.xlane.f32.xlu0 %v1990_v39 }
 0x9c7   : > { %v1993_v1 = vpop.xlane.xlu0 %1992 }
 0x9c8   : > { %v2008_v8 = vmul.f32 0.0078125, %v1993_v1  ;;  %v4019_v1 = vld [vmem:[%s4325_s27 + $0x20] sm:$0xff]  }
 0x9c9   : > { %v1995_v25 = vpop.xlane.xlu1 %1994 }
 0x9ca   : > { %v2016_v37 = vadd.f32 1e-06, %v2008_v8  ;;  %v2009_v27 = vmul.f32 0.0078125, %v1995_v25  ;;  %v4020_v8 = vld [vmem:[%s4325_s27 + $0xa0] sm:$0xff]  }
 0x9cb   : > { %v1997_v47 = vpop.xlane.xlu0 %1996 }
 0x9cc   : > { %4113 = vrsqrt.f32 %v2016_v37  ;;  %v2017_v29 = vadd.f32 1e-06, %v2009_v27  ;;  %v2010_v9 = vmul.f32 0.0078125, %v1997_v47  ;;  %v4021_v37 = vld [vmem:[%s4325_s27 + $0x68] sm:$0xff]  }
 0x9cd   : > { %v4022_v27 = vld [vmem:[%s4325_s27 + $0xe8] sm:$0xff]  }
 0x9ce   : > { %4115 = vrsqrt.f32 %v2017_v29  ;;  %v2018_v22 = vadd.f32 1e-06, %v2010_v9 }
 0x9cf   : > { %v1999_v5 = vpop.xlane.xlu0 %1998 }
 0x9d0   : > { %v2011_v6 = vmul.f32 0.0078125, %v1999_v5  ;;  %4117 = vrsqrt.f32 %v2018_v22  ;;  %v4023_v5 = vld [vmem:[%s4325_s27 + $0x28] sm:$0xff]  }
 0x9d1   : > { %v2003_v57 = vpop.xlane.xlu1 %2002 }
 0x9d2   : > { %v2019_v2 = vadd.f32 1e-06, %v2011_v6  ;;  %v2013_v3 = vmul.f32 0.0078125, %v2003_v57  ;;  %v4024_v6 = vld [vmem:[%s4325_s27 + $0xa8] sm:$0xff]   ;;  %v4026_v57 = vld [vmem:[%s4325_s27 + $0xf0] sm:$0xff]  }
 0x9d3   : > { %v2001_v12 = vpop.xlane.xlu0 %2000 }
 0x9d4   : > { %4119 = vrsqrt.f32 %v2019_v2  ;;  %v2012_v20 = vmul.f32 0.0078125, %v2001_v12  ;;  %v2021_v14 = vadd.f32 1e-06, %v2013_v3  ;;  %v4027_v2 = vld [vmem:[%s4325_s27 + $0x30] sm:$0xff]   ;;  %v4029_v3 = vld [vmem:[%s4325_s27 + $0x78] sm:$0xff]  }
 0x9d5   : > { %v2007_v59 = vpop.xlane.xlu1 %2006  ;;  %v4028_v12 = vld [vmem:[%s4325_s27 + $0xb0] sm:$0xff]  }
 0x9d6   : > { %v4114_v38 = vpop.eup %4113  ;;  %v2020_v60 = vadd.f32 1e-06, %v2012_v20  ;;  %v2015_v31 = vmul.f32 0.0078125, %v2007_v59  ;;  %v4030_v20 = vld [vmem:[%s4325_s27 + $0xf8] sm:$0xff]  }
 0x9d7   : > { %v2005_v10 = vpop.xlane.xlu0 %2004  ;;  %v2032_v15 = vmul.f32 %v4114_v38, %v4759_v62  ;;  %v4031_v38 = vld [vmem:[%s4325_s27 + $0x38] sm:$0xff]  }
 0x9d8   : > { %v4116_v13 = vpop.eup %4115  ;;  %4121 = vrsqrt.f32 %v2020_v60  ;;  %v2014_v16 = vmul.f32 0.0078125, %v2005_v10  ;;  %v2023_v52 = vadd.f32 1e-06, %v2015_v31  ;;  %v4032_v60 = vld [vmem:[%s4325_s27 + $0xb8] sm:$0xff]  }
 0x9d9   : > { %v2033_v28 = vmul.f32 %v4116_v13, %v4763_v7  ;;  %4123 = vrsqrt.f32 %v2021_v14 }
 0x9da   : > { %v4118_v41 = vpop.eup %4117  ;;  %v2022_v54 = vadd.f32 1e-06, %v2014_v16 }
 0x9db   : > { %v2040_v17 = vpack.c.bf16 %v2033_v28, %v2032_v15  ;;  %v2034_v48 = vmul.f32 %v4118_v41, %v4761_v4 }
 0x9dc   : > { %4125 = vrsqrt.f32 %v2022_v54 }
 0x9dd   : > { %2269 = vmatmul.mubr.bf16.vlgmr.msra.gmra.mrb[32].mxu1 %v2040_v17  ;;  %2342 = vmatmul.mubr.bf16.vlgmr.msra.gmra.mrb[32].mxu0 %v2040_v17  ;;  %4127 = vrsqrt.f32 %v2023_v52 }
 0x9de   : > { %v4120_v39 = vpop.eup %4119  ;;  %2278 = vmatprep.mubr.bf16.mxu1 %v4198_v34  ;;  %2351 = vmatprep.mubr.bf16.mxu0 %v4198_v34 }
 0x9df   : > { %v2035_v30 = vmul.f32 %v4120_v39, %v4769_v11  ;;  %3531 = vmatpush3.bf16.msra.mxu1 %v4003_v0  ;;  %3571 = vmatpush3.bf16.msra.mxu0 %v4004_v19 }
 0x9e0   : > { %3532 = vmatprep.subr.bf16.mxu1 %v4005_v32  ;;  %3572 = vmatprep.subr.bf16.mxu0 %v4006_v36 }
 0x9e1   : > { %v2041_v33 = vpack.c.bf16 %v2035_v30, %v2034_v48 }
 0x9e2   : > { %v4122_v51 = vpop.eup %4121 }
 0x9e3   : > { %3533 = vmatpush3.bf16.msra.mxu1 %v4007_v42  ;;  %3573 = vmatpush3.bf16.msra.mxu0 %v4008_v43  ;;  %v4124_v55 = vpop.eup %4123  ;;  %v2036_v24 = vmul.f32 %v4122_v51, %v4773_v21 }
 0x9e4   : > { %3534 = vmatprep.subr.bf16.mxu1 %v4009_v44  ;;  %3574 = vmatprep.subr.bf16.mxu0 %v4010_v46  ;;  %v2037_v23 = vmul.f32 %v4124_v55, %v4775_v63 }
 0x9e5   : > { %2279 = vmatmul.mubr.bf16.gmra.mrb[36].mxu1 %v2041_v33  ;;  %2352 = vmatmul.mubr.bf16.gmra.mrb[36].mxu0 %v2041_v33 }
 0x9e6   : > { %2288 = vmatprep.mubr.bf16.mxu1 %v4198_v34  ;;  %2361 = vmatprep.mubr.bf16.mxu0 %v4198_v34  ;;  %v2042_v18 = vpack.c.bf16 %v2037_v23, %v2036_v24  ;;  %v4126_v25 = vpop.eup %4125 }
 0x9e7   : > { %3535 = vmatpush3.bf16.msra.mxu1 %v4011_v49  ;;  %3575 = vmatpush3.bf16.msra.mxu0 %v4012_v50  ;;  %v4128_v47 = vpop.eup %4127  ;;  %v2038_v29 = vmul.f32 %v4126_v25, %v4783_v35 }
 0x9e8   : > { %3536 = vmatprep.subr.bf16.mxu1 %v4013_v61  ;;  %3576 = vmatprep.subr.bf16.mxu0 %v4014_v53  ;;  %v2039_v9 = vmul.f32 %v4128_v47, %v4779_v45 }
 0x9ea   : > { %v2043_v22 = vpack.c.bf16 %v2039_v9, %v2038_v29 }
 0x9eb   : > { %3537 = vmatpush3.bf16.msra.mxu1 %v4015_v56  ;;  %3577 = vmatpush3.bf16.msra.mxu0 %v4016_v40 }
 0x9ec   : > { %3538 = vmatprep.subr.bf16.mxu1 %v4017_v26  ;;  %3578 = vmatprep.subr.bf16.mxu0 %v4018_v58 }
 0x9ed   : > { %2289 = vmatmul.mubr.bf16.gmra.mrb[40].mxu1 %v2042_v18  ;;  %2362 = vmatmul.mubr.bf16.gmra.mrb[40].mxu0 %v2042_v18 }
 0x9ee   : > { %2298 = vmatprep.mubr.bf16.mxu1 %v4198_v34  ;;  %2371 = vmatprep.mubr.bf16.mxu0 %v4198_v34  ;;  %v4025_v34 = vld [vmem:[%s4325_s27 + $0x70] sm:$0xff]  }
 0x9ef   : > { %3539 = vmatpush3.bf16.msra.mxu1 %v4019_v1  ;;  %3579 = vmatpush3.bf16.msra.mxu0 %v4020_v8 }
 0x9f0   : > { %3540 = vmatprep.subr.bf16.mxu1 %v4021_v37  ;;  %3580 = vmatprep.subr.bf16.mxu0 %v4022_v27 }
 0x9f3   : > { %3541 = vmatpush3.bf16.msra.mxu1 %v4023_v5  ;;  %3581 = vmatpush3.bf16.msra.mxu0 %v4024_v6 }
 0x9f4   : > { %3542 = vmatprep.subr.bf16.mxu1 %v4025_v34  ;;  %3582 = vmatprep.subr.bf16.mxu0 %v4026_v57 }
 0x9f5   : > { %2299 = vmatmul.mubr.bf16.gmra.mrb[44].mxu1 %v2043_v22  ;;  %2372 = vmatmul.mubr.bf16.gmra.mrb[44].mxu0 %v2043_v22 }
 0x9f7   : > { %3543 = vmatpush3.bf16.msra.mxu1 %v4027_v2  ;;  %3583 = vmatpush3.bf16.msra.mxu0 %v4028_v12 }
 0x9f8   : > { %3544 = vmatprep.subr.bf16.mxu1 %v4029_v3  ;;  %3584 = vmatprep.subr.bf16.mxu0 %v4030_v20 }
 0x9fb   : > { %3545 = vmatpush3.bf16.msra.mxu1 %v4031_v38  ;;  %3585 = vmatpush3.bf16.msra.mxu0 %v4032_v60 }
 0xab0   : > { %v2270_v10 = vpop.f32.mrb[32].mxu1  ;;  %v2343_v13 = vpop.f32.mrb[32].mxu0 }
 0xab1   : > { %v2382_v14 = vmax.f32 %v2270_v10, 0.0  ;;  %v2384_v15 = vmax.f32 %v2343_v13, 0.0  ;;  %v2272_v28 = vpop.f32.mrb[33].mxu1  ;;  %v2345_v59 = vpop.f32.mrb[33].mxu0 }
 0xab2   : > { %v2383_v16 = vmax.f32 %v2272_v28, 0.0  ;;  %v2385_v17 = vmax.f32 %v2345_v59, 0.0  ;;  %v2274_v0 = vpop.f32.mrb[34].mxu1  ;;  %v2347_v19 = vpop.f32.mrb[34].mxu0 }
 0xab3   : > { %v2386_v31 = vmax.f32 %v2274_v0, 0.0  ;;  %v2388_v32 = vmax.f32 %v2347_v19, 0.0  ;;  %v2276_v36 = vpop.f32.mrb[35].mxu1  ;;  %v2349_v41 = vpop.f32.mrb[35].mxu0  ;;  %v2414_v30 = vmul.f32 %v2382_v14, %v2382_v14  ;;  %v2416_v42 = vmul.f32 %v2384_v15, %v2384_v15 }
 0xab4   : > { %v2387_v39 = vmax.f32 %v2276_v36, 0.0  ;;  %v2389_v54 = vmax.f32 %v2349_v41, 0.0  ;;  %v2415_v44 = vmul.f32 %v2383_v16, %v2383_v16  ;;  %v2417_v46 = vmul.f32 %v2385_v17, %v2385_v17 }
 0xab5   : > { %v2418_v43 = vmul.f32 %v2386_v31, %v2386_v31  ;;  %v2420_v52 = vmul.f32 %v2388_v32, %v2388_v32 }
 0xab6   : > { %v2419_v48 = vmul.f32 %v2387_v39, %v2387_v39  ;;  %v2421_v33 = vmul.f32 %v2389_v54, %v2389_v54 }
 0xab7   : > { %v2446_v49 = vpack.c.bf16 %v2418_v43, %v2414_v30  ;;  %v2448_v50 = vpack.c.bf16 %v2420_v52, %v2416_v42 }
 0xab8   : > { %v2447_v51 = vpack.c.bf16 %v2419_v48, %v2415_v44  ;;  %v2449_v61 = vpack.c.bf16 %v2421_v33, %v2417_v46  ;;  %v2280_v53 = vpop.f32.mrb[36].mxu1  ;;  %v2353_v55 = vpop.f32.mrb[36].mxu0 }
 0xab9   : > { %v2390_v24 = vmax.f32 %v2280_v53, 0.0  ;;  %v2392_v56 = vmax.f32 %v2353_v55, 0.0  ;;  %v2282_v40 = vpop.f32.mrb[37].mxu1  ;;  %v2355_v26 = vpop.f32.mrb[37].mxu0 }
 0xaba   : > { %v2391_v58 = vmax.f32 %v2282_v40, 0.0  ;;  %v2393_v23 = vmax.f32 %v2355_v26, 0.0  ;;  %v2284_v18 = vpop.f32.mrb[38].mxu1  ;;  %v2357_v1 = vpop.f32.mrb[38].mxu0  ;;  %2750 = vmatprep.mubr.bf16.mxu1 %v2447_v51  ;;  %2815 = vmatprep.mubr.bf16.mxu0 %v2449_v61 }
 0xabb   : > { %v2394_v8 = vmax.f32 %v2284_v18, 0.0  ;;  %v2396_v25 = vmax.f32 %v2357_v1, 0.0  ;;  %v2286_v37 = vpop.f32.mrb[39].mxu1  ;;  %v2359_v27 = vpop.f32.mrb[39].mxu0  ;;  %2751 = vmatmul.mubr.bf16.vlgmr.msra.gmra.mrb[48].mxu1 %v2446_v49  ;;  %2816 = vmatmul.mubr.bf16.vlgmr.msra.gmra.mrb[48].mxu0 %v2448_v50  ;;  %v2422_v9 = vmul.f32 %v2390_v24, %v2390_v24  ;;  %v2424_v22 = vmul.f32 %v2392_v56, %v2392_v56 }
 0xabc   : > { %v2395_v47 = vmax.f32 %v2286_v37, 0.0  ;;  %v2397_v29 = vmax.f32 %v2359_v27, 0.0  ;;  %v2423_v34 = vmul.f32 %v2391_v58, %v2391_v58  ;;  %v2425_v57 = vmul.f32 %v2393_v23, %v2393_v23 }
 0xabd   : > { %v2426_v5 = vmul.f32 %v2394_v8, %v2394_v8  ;;  %v2428_v6 = vmul.f32 %v2396_v25, %v2396_v25 }
 0xabe   : > { %v2427_v2 = vmul.f32 %v2395_v47, %v2395_v47  ;;  %v2429_v12 = vmul.f32 %v2397_v29, %v2397_v29 }
 0xabf   : > { %v2450_v3 = vpack.c.bf16 %v2426_v5, %v2422_v9  ;;  %v2452_v20 = vpack.c.bf16 %v2428_v6, %v2424_v22 }
 0xac0   : > { %v2451_v38 = vpack.c.bf16 %v2427_v2, %v2423_v34  ;;  %v2453_v60 = vpack.c.bf16 %v2429_v12, %v2425_v57  ;;  %v2290_v10 = vpop.f32.mrb[40].mxu1  ;;  %v2363_v13 = vpop.f32.mrb[40].mxu0 }
 0xac1   : > { %v2398_v14 = vmax.f32 %v2290_v10, 0.0  ;;  %v2400_v15 = vmax.f32 %v2363_v13, 0.0  ;;  %v2292_v28 = vpop.f32.mrb[41].mxu1  ;;  %v2365_v59 = vpop.f32.mrb[41].mxu0 }
 0xac2   : > { %v2399_v16 = vmax.f32 %v2292_v28, 0.0  ;;  %v2401_v17 = vmax.f32 %v2365_v59, 0.0  ;;  %v2294_v0 = vpop.f32.mrb[42].mxu1  ;;  %v2367_v19 = vpop.f32.mrb[42].mxu0  ;;  %2758 = vmatprep.mubr.bf16.mxu1 %v2451_v38  ;;  %2823 = vmatprep.mubr.bf16.mxu0 %v2453_v60 }
 0xac3   : > { %v2402_v31 = vmax.f32 %v2294_v0, 0.0  ;;  %v2404_v32 = vmax.f32 %v2367_v19, 0.0  ;;  %v2296_v36 = vpop.f32.mrb[43].mxu1  ;;  %v2369_v41 = vpop.f32.mrb[43].mxu0  ;;  %2759 = vmatmul.mubr.bf16.gmra.mrb[52].mxu1 %v2450_v3  ;;  %2824 = vmatmul.mubr.bf16.gmra.mrb[52].mxu0 %v2452_v20  ;;  %v2430_v30 = vmul.f32 %v2398_v14, %v2398_v14  ;;  %v2432_v42 = vmul.f32 %v2400_v15, %v2400_v15 }
 0xac4   : > { %v2403_v39 = vmax.f32 %v2296_v36, 0.0  ;;  %v2405_v54 = vmax.f32 %v2369_v41, 0.0  ;;  %v2431_v44 = vmul.f32 %v2399_v16, %v2399_v16  ;;  %v2433_v46 = vmul.f32 %v2401_v17, %v2401_v17 }
 0xac5   : > { %v2434_v43 = vmul.f32 %v2402_v31, %v2402_v31  ;;  %v2436_v52 = vmul.f32 %v2404_v32, %v2404_v32 }
 0xac6   : > { %v2435_v48 = vmul.f32 %v2403_v39, %v2403_v39  ;;  %v2437_v33 = vmul.f32 %v2405_v54, %v2405_v54 }
 0xac7   : > { %v2454_v49 = vpack.c.bf16 %v2434_v43, %v2430_v30  ;;  %v2456_v50 = vpack.c.bf16 %v2436_v52, %v2432_v42 }
 0xac8   : > { %v2455_v51 = vpack.c.bf16 %v2435_v48, %v2431_v44  ;;  %v2457_v61 = vpack.c.bf16 %v2437_v33, %v2433_v46  ;;  %v2300_v53 = vpop.f32.mrb[44].mxu1  ;;  %v2373_v55 = vpop.f32.mrb[44].mxu0 }
 0xac9   : > { %v2406_v24 = vmax.f32 %v2300_v53, 0.0  ;;  %v2408_v56 = vmax.f32 %v2373_v55, 0.0  ;;  %v2302_v40 = vpop.f32.mrb[45].mxu1  ;;  %v2375_v26 = vpop.f32.mrb[45].mxu0 }
 0xaca   : > { %v2407_v58 = vmax.f32 %v2302_v40, 0.0  ;;  %v2409_v23 = vmax.f32 %v2375_v26, 0.0  ;;  %v2304_v18 = vpop.f32.mrb[46].mxu1  ;;  %v2377_v1 = vpop.f32.mrb[46].mxu0  ;;  %2766 = vmatprep.mubr.bf16.mxu1 %v2455_v51  ;;  %2831 = vmatprep.mubr.bf16.mxu0 %v2457_v61 }
 0xacb   : > { %v2410_v8 = vmax.f32 %v2304_v18, 0.0  ;;  %v2412_v25 = vmax.f32 %v2377_v1, 0.0  ;;  %v2306_v37 = vpop.f32.mrb[47].mxu1  ;;  %v2379_v27 = vpop.f32.mrb[47].mxu0  ;;  %2767 = vmatmul.mubr.bf16.gmra.mrb[56].mxu1 %v2454_v49  ;;  %2832 = vmatmul.mubr.bf16.gmra.mrb[56].mxu0 %v2456_v50  ;;  %v2438_v9 = vmul.f32 %v2406_v24, %v2406_v24  ;;  %v2440_v22 = vmul.f32 %v2408_v56, %v2408_v56 }
 0xacc   : > { %v2411_v47 = vmax.f32 %v2306_v37, 0.0  ;;  %v2413_v29 = vmax.f32 %v2379_v27, 0.0  ;;  %v2439_v34 = vmul.f32 %v2407_v58, %v2407_v58  ;;  %v2441_v57 = vmul.f32 %v2409_v23, %v2409_v23 }
 0xacd   : > { %v2442_v5 = vmul.f32 %v2410_v8, %v2410_v8  ;;  %v2444_v6 = vmul.f32 %v2412_v25, %v2412_v25 }
 0xace   : > { %v2443_v2 = vmul.f32 %v2411_v47, %v2411_v47  ;;  %v2445_v12 = vmul.f32 %v2413_v29, %v2413_v29 }
 0xacf   : > { %v2458_v3 = vpack.c.bf16 %v2442_v5, %v2438_v9  ;;  %v2460_v20 = vpack.c.bf16 %v2444_v6, %v2440_v22 }
 0xad0   : > { %v2459_v38 = vpack.c.bf16 %v2443_v2, %v2439_v34  ;;  %v2461_v60 = vpack.c.bf16 %v2445_v12, %v2441_v57 }
 0xad2   : > { %2774 = vmatprep.mubr.bf16.mxu1 %v2459_v38  ;;  %2839 = vmatprep.mubr.bf16.mxu0 %v2461_v60 }
 0xad3   : > { %2775 = vmatmul.mubr.bf16.gmra.mrb[60].mxu1 %v2458_v3  ;;  %2840 = vmatmul.mubr.bf16.gmra.mrb[60].mxu0 %v2460_v20 }
 0xb8e   : > { %v3546_v10 = vpop.f32.mrb[48].mxu1  ;;  %v3586_v13 = vpop.f32.mrb[48].mxu0 }
 0xb8f   : > { %v3547_v14 = vpop.f32.mrb[49].mxu1  ;;  %v3587_v15 = vpop.f32.mrb[49].mxu0 }
 0xb90   : > { %v3548_v28 = vadd.f32 %v3547_v14, %v3546_v10  ;;  %v3588_v59 = vadd.f32 %v3587_v15, %v3586_v13  ;;  %v3549_v16 = vpop.f32.mrb[50].mxu1  ;;  %v3589_v17 = vpop.f32.mrb[50].mxu0 }
 0xb91   : > { %v3550_v0 = vpop.f32.mrb[51].mxu1  ;;  %v3590_v19 = vpop.f32.mrb[51].mxu0 }
 0xb92   : > { %v2818_v31 = vadd.f32 %v3588_v59, %v3548_v28  ;;  %v3551_v32 = vadd.f32 %v3550_v0, %v3549_v16  ;;  %v3591_v36 = vadd.f32 %v3590_v19, %v3589_v17  ;;  %v2956_v0 = vld [vmem:[%s5021_s24] sm:$0xff] (!%p3421_p9)  ;;  %v2957_v19 = vld [vmem:[%s5021_s24 + $0x8] sm:$0xff] (!%p3421_p9) }
 0xb94   : > { %v4858_v41 = vadd.f32 %v2818_v31, %v4759_v62  ;;  %v2821_v39 = vadd.f32 %v3591_v36, %v3551_v32  ;;  %v3783_v31 = vpack.c.bf16 (!%p3421_p9), %v2957_v19, %v2956_v0  ;;  %v4200_v32 = vmov (!%p3421_p9), 0.0|0.0   ;;  %v2958_v36 = vld [vmem:[%s5021_s24 + $0x10] sm:$0xff] (!%p3421_p9) }
 0xb95   : > { %3782 = vmatprep.subr.bf16.mxu0 (!%p3421_p9), %v4200_v32 }
 0xb96   : > { %2856 = vst [vmem:[#allocation2] sm:$0xff] %v4858_v41  ;;  %v4862_v54 = vadd.f32 %v2821_v39, %v4763_v7  ;;  %v3552_v30 = vpop.f32.mrb[52].mxu1  ;;  %v3592_v42 = vpop.f32.mrb[52].mxu0  ;;  %v2868_v15 = vmul.f32 (!%p3421_p9), %v4858_v41, %v4858_v41  ;;  %3784 = vmatpush3.bf16.msra.mxu0 (!%p3421_p9), %v3783_v31  ;;  %v2959_v39 = vld [vmem:[%s5021_s24 + $0x18] sm:$0xff] (!%p3421_p9) }
 0xb97   : > { %v3553_v43 = vpop.f32.mrb[53].mxu1  ;;  %v3593_v52 = vpop.f32.mrb[53].mxu0  ;;  %3785 = vmatprep.subr.bf16.mxu0 (!%p3421_p9), %v4200_v32 }
 0xb98   : > { %2857 = vst [vmem:[#allocation2 + $0x8] sm:$0xff] %v4862_v54  ;;  %v3554_v44 = vadd.f32 %v3553_v43, %v3552_v30  ;;  %v3594_v46 = vadd.f32 %v3593_v52, %v3592_v42  ;;  %v3555_v48 = vpop.f32.mrb[54].mxu1  ;;  %v3595_v33 = vpop.f32.mrb[54].mxu0  ;;  %2876 = vadd.xlane.f32.xlu0 (!%p3421_p9), %v2868_v15  ;;  %v3786_v30 = vpack.c.bf16 (!%p3421_p9), %v2959_v39, %v2958_v36  ;;  %v2960_v42 = vld [vmem:[%s5021_s24 + $0x20] sm:$0xff] (!%p3421_p9)  ;;  %v2961_v43 = vld [vmem:[%s5021_s24 + $0x28] sm:$0xff] (!%p3421_p9) }
 0xb99   : > { %v3556_v49 = vpop.f32.mrb[55].mxu1  ;;  %v3596_v50 = vpop.f32.mrb[55].mxu0  ;;  %v3789_v52 = vpack.c.bf16 (!%p3421_p9), %v2961_v43, %v2960_v42 }
 0xb9a   : > { %v2826_v62 = vadd.f32 %v3594_v46, %v3554_v44  ;;  %v3557_v51 = vadd.f32 %v3556_v49, %v3555_v48  ;;  %v3597_v61 = vadd.f32 %v3596_v50, %v3595_v33  ;;  %3787 = vmatpush3.bf16.msra.mxu0 (!%p3421_p9), %v3786_v30  ;;  %v2962_v44 = vld [vmem:[%s5021_s24 + $0x30] sm:$0xff] (!%p3421_p9)  ;;  %v2963_v46 = vld [vmem:[%s5021_s24 + $0x38] sm:$0xff] (!%p3421_p9)  ;;  %v2964_v33 = vld [vmem:[%s5021_s24 + $0x40] sm:$0xff] (!%p3421_p9) }
 0xb9b   : > { %3788 = vmatprep.subr.bf16.mxu0 (!%p3421_p9), %v4200_v32  ;;  %v3792_v48 = vpack.c.bf16 (!%p3421_p9), %v2963_v46, %v2962_v44  ;;  %v2965_v49 = vld [vmem:[%s5021_s24 + $0x48] sm:$0xff] (!%p3421_p9) }
 0xb9c   : > { %v4866_v53 = vadd.f32 %v2826_v62, %v4761_v4  ;;  %v2829_v7 = vadd.f32 %v3597_v61, %v3557_v51  ;;  %v3795_v50 = vpack.c.bf16 (!%p3421_p9), %v2965_v49, %v2964_v33  ;;  %v2966_v62 = vld [vmem:[%s5021_s24 + $0x50] sm:$0xff] (!%p3421_p9)  ;;  %v2967_v51 = vld [vmem:[%s5021_s24 + $0x58] sm:$0xff] (!%p3421_p9) }
 0xb9d   : > { %v3798_v61 = vpack.c.bf16 (!%p3421_p9), %v2967_v51, %v2966_v62 }
 0xb9e   : > { %2858 = vst [vmem:[#allocation2 + $0x10] sm:$0xff] %v4866_v53  ;;  %v4870_v55 = vadd.f32 %v2829_v7, %v4769_v11  ;;  %v3558_v24 = vpop.f32.mrb[56].mxu1  ;;  %v3598_v56 = vpop.f32.mrb[56].mxu0  ;;  %v2870_v14 = vmul.f32 (!%p3421_p9), %v4866_v53, %v4866_v53  ;;  %3790 = vmatpush3.bf16.msra.mxu0 (!%p3421_p9), %v3789_v52  ;;  %v2968_v7 = vld [vmem:[%s5021_s24 + $0x60] sm:$0xff] (!%p3421_p9) }
 0xb9f   : > { %v3559_v40 = vpop.f32.mrb[57].mxu1  ;;  %v3599_v26 = vpop.f32.mrb[57].mxu0  ;;  %3791 = vmatprep.subr.bf16.mxu0 (!%p3421_p9), %v4200_v32 }
 0xba0   : > { %2859 = vst [vmem:[#allocation2 + $0x18] sm:$0xff] %v4870_v55  ;;  %v3560_v58 = vadd.f32 %v3559_v40, %v3558_v24  ;;  %v3600_v23 = vadd.f32 %v3599_v26, %v3598_v56  ;;  %v3561_v18 = vpop.f32.mrb[58].mxu1  ;;  %v3601_v1 = vpop.f32.mrb[58].mxu0  ;;  %2880 = vadd.xlane.f32.xlu1 (!%p3421_p9), %v2870_v14  ;;  %v2969_v24 = vld [vmem:[%s5021_s24 + $0x68] sm:$0xff] (!%p3421_p9)  ;;  %v2970_v40 = vld [vmem:[%s5021_s24 + $0x70] sm:$0xff] (!%p3421_p9)  ;;  %v2971_v26 = vld [vmem:[%s5021_s24 + $0x78] sm:$0xff] (!%p3421_p9) }
 0xba1   : > { %v3562_v8 = vpop.f32.mrb[59].mxu1  ;;  %v3602_v25 = vpop.f32.mrb[59].mxu0  ;;  %v3801_v56 = vpack.c.bf16 (!%p3421_p9), %v2969_v24, %v2968_v7 }
 0xba2   : > { %v2834_v4 = vadd.f32 %v3600_v23, %v3560_v58  ;;  %v3563_v37 = vadd.f32 %v3562_v8, %v3561_v18  ;;  %v3603_v27 = vadd.f32 %v3602_v25, %v3601_v1  ;;  %3793 = vmatpush3.bf16.msra.mxu0 (!%p3421_p9), %v3792_v48  ;;  %v4202_v58 = vmov (!%p3421_p9), 0.0  }
 0xba3   : > { %3794 = vmatprep.subr.bf16.mxu0 (!%p3421_p9), %v4200_v32  ;;  %3779 = vmatprep.mubr.msk.f32.mxu0 (!%p3421_p9), %vm4201_vm1, %v4202_v58  ;;  %v3804_v23 = vpack.c.bf16 (!%p3421_p9), %v2971_v26, %v2970_v40 }
 0xba4   : > { %v4874_v47 = vadd.f32 %v2834_v4, %v4773_v21  ;;  %v2837_v11 = vadd.f32 %v3603_v27, %v3563_v37 }
 0xba6   : > { %2860 = vst [vmem:[#allocation2 + $0x20] sm:$0xff] %v4874_v47  ;;  %v4878_v29 = vadd.f32 %v2837_v11, %v4775_v63  ;;  %v3564_v9 = vpop.f32.mrb[60].mxu1  ;;  %v3604_v22 = vpop.f32.mrb[60].mxu0  ;;  %v2872_v59 = vmul.f32 (!%p3421_p9), %v4874_v47, %v4874_v47  ;;  %3796 = vmatpush3.bf16.msra.mxu0 (!%p3421_p9), %v3795_v50 }
 0xba7   : > { %v3565_v5 = vpop.f32.mrb[61].mxu1  ;;  %v3605_v6 = vpop.f32.mrb[61].mxu0  ;;  %3797 = vmatprep.subr.bf16.mxu0 (!%p3421_p9), %v4200_v32 }
 0xba8   : > { %2861 = vst [vmem:[#allocation2 + $0x28] sm:$0xff] %v4878_v29  ;;  %v3566_v34 = vadd.f32 %v3565_v5, %v3564_v9  ;;  %v3606_v57 = vadd.f32 %v3605_v6, %v3604_v22  ;;  %v3567_v2 = vpop.f32.mrb[62].mxu1  ;;  %v3607_v12 = vpop.f32.mrb[62].mxu0  ;;  %v2873_v28 = vmul.f32 (!%p3421_p9), %v4878_v29, %v4878_v29 }
 0xba9   : > { %v3568_v3 = vpop.f32.mrb[63].mxu1  ;;  %v3608_v20 = vpop.f32.mrb[63].mxu0 }
 0xbaa   : > { %v2842_v21 = vadd.f32 %v3606_v57, %v3566_v34  ;;  %v3569_v38 = vadd.f32 %v3568_v3, %v3567_v2  ;;  %v3609_v60 = vadd.f32 %v3608_v20, %v3607_v12  ;;  %2867 = sbr.rel (%p3421_p9) target bundleno = 3831 (0xef7), region = 68  ;;  %3799 = vmatpush3.bf16.msra.mxu0 (!%p3421_p9), %v3798_v61 }
 0xbab   : > { %3800 = vmatprep.subr.bf16.mxu0 (!%p3421_p9), %v4200_v32 }
 0xbac   : > { %v4882_v10 = vadd.f32 %v2842_v21, %v4783_v35  ;;  %v2845_v63 = vadd.f32 %v3609_v60, %v3569_v38  ;;  %v2871_v35 = vmul.f32 (!%p3421_p9), %v4870_v55, %v4870_v55 }
 0xbae   : > { %2862 = vst [vmem:[#allocation2 + $0x30] sm:$0xff] %v4882_v10  ;;  %v4886_v13 = vadd.f32 %v2845_v63, %v4779_v45  ;;  %v2869_v45 = vmul.f32 (!%p3421_p9), %v4862_v54, %v4862_v54  ;;  %2882 = vadd.xlane.f32.xlu1 (!%p3421_p9), %v2871_v35  ;;  %v2874_v17 = vmul.f32 (!%p3421_p9), %v4882_v10, %v4882_v10 }
 0xbaf   : > { %3802 = vmatpush3.bf16.msra.mxu0 (!%p3421_p9), %v3801_v56 }
 0xbb0   : > { %2863 = vst [vmem:[#allocation2 + $0x38] sm:$0xff] %v4886_v13  ;;  %2878 = vadd.xlane.f32.xlu0 (!%p3421_p9), %v2869_v45  ;;  %v2875_v16 = vmul.f32 (!%p3421_p9), %v4886_v13, %v4886_v13  ;;  %3803 = vmatprep.subr.bf16.mxu0 (!%p3421_p9), %v4200_v32 }
 0xbb2   : > { %2886 = vadd.xlane.f32.xlu1 %v2873_v28 }
 0xbb3   : > { %3805 = vmatpush3.bf16.msra.mxu0 %v3804_v23 }
 0xbb4   : > { %2884 = vadd.xlane.f32.xlu0 %v2872_v59 }
 0xbb6   : > { %2890 = vadd.xlane.f32.xlu1 %v2875_v16 }
 0xbb8   : > { %2888 = vadd.xlane.f32.xlu0 %v2874_v17 }
 0xc25   : > { %v2877_v1 = vpop.xlane.xlu0 %2876 }
 0xc26   : > { %v2892_v25 = vmul.f32 0.0078125, %v2877_v1 }
 0xc28   : > { %v2900_v37 = vadd.f32 1e-06, %v2892_v25 }
 0xc2d   : > { %v2881_v18 = vpop.xlane.xlu1 %2880 }
 0xc2e   : > { %v2894_v8 = vmul.f32 0.0078125, %v2881_v18 }
 0xc30   : > { %v2902_v4 = vadd.f32 1e-06, %v2894_v8 }
 0xc32   : > { %4138 = vrsqrt.f32 %v2902_v4 }
 0xc33   : > { %4140 = vrsqrt.f32 %v2900_v37 }
 0xc3b   : > { %v2883_v27 = vpop.xlane.xlu1 %2882 }
 0xc3c   : > { %v2895_v9 = vmul.f32 0.0078125, %v2883_v27  ;;  %v4139_v35 = vpop.eup %4138 }
 0xc3d   : > { %v2879_v11 = vpop.xlane.xlu0 %2878  ;;  %v4141_v45 = vpop.eup %4140  ;;  %v2918_v16 = vmul.f32 %v4139_v35, %v4866_v53 }
 0xc3e   : > { %v2893_v22 = vmul.f32 0.0078125, %v2879_v11  ;;  %v2903_v5 = vadd.f32 1e-06, %v2895_v9  ;;  %v2916_v0 = vmul.f32 %v4141_v45, %v4858_v41 }
 0xc3f   : > { %v2887_v34 = vpop.xlane.xlu1 %2886 }
 0xc40   : > { %v2901_v6 = vadd.f32 1e-06, %v2893_v22  ;;  %4142 = vrsqrt.f32 %v2903_v5  ;;  %v2897_v2 = vmul.f32 0.0078125, %v2887_v34  ;;  %v4203_v34 = vmov 0  }
 0xc41   : > { %v2885_v57 = vpop.xlane.xlu0 %2884  ;;  %4137 = vset.pattern.permute.xlu0 %v4203_v34 }
 0xc42   : > { %v2896_v12 = vmul.f32 0.0078125, %v2885_v57  ;;  %4144 = vrsqrt.f32 %v2901_v6  ;;  %v2905_v3 = vadd.f32 1e-06, %v2897_v2 }
 0xc43   : > { %v2891_v21 = vpop.xlane.xlu1 %2890 }
 0xc44   : > { %v2904_v20 = vadd.f32 1e-06, %v2896_v12  ;;  %4146 = vrsqrt.f32 %v2905_v3  ;;  %v2899_v60 = vmul.f32 0.0078125, %v2891_v21  ;;  %v3053_v3 = vld [vmem:[%s501_s23] sm:$0xf] }
 0xc45   : > { %v2889_v38 = vpop.xlane.xlu0 %2888 }
 0xc46   : > { %v2898_v63 = vmul.f32 0.0078125, %v2889_v38  ;;  %4148 = vrsqrt.f32 %v2904_v20  ;;  %v2907_v14 = vadd.f32 1e-06, %v2899_v60  ;;  %v3054_v20 = vlaneseq }
 0xc48   : > { %v2906_v15 = vadd.f32 1e-06, %v2898_v63  ;;  %4150 = vrsqrt.f32 %v2907_v14  ;;  %v3055_v21 = vand.u32 127, %v3054_v20 }
 0xc4a   : > { %4152 = vrsqrt.f32 %v2906_v15  ;;  %v4143_v28 = vpop.eup %4142 }
 0xc4b   : > { %v2919_v17 = vmul.f32 %v4143_v28, %v4870_v55 }
 0xc4c   : > { %v4145_v59 = vpop.eup %4144 }
 0xc4d   : > { %v2917_v19 = vmul.f32 %v4145_v59, %v4862_v54  ;;  %v2931_v31 = vadd.f32 %v2919_v17, %v2918_v16 }
 0xc4e   : > { %v4147_v32 = vpop.eup %4146 }
 0xc4f   : > { %v2924_v36 = vadd.f32 %v2917_v19, %v2916_v0  ;;  %v2932_v30 = vrot.slane %v2931_v31, 4  ;;  %v2921_v42 = vmul.f32 %v4147_v32, %v4878_v29 }
 0xc50   : > { %v4149_v39 = vpop.eup %4148 }
 0xc51   : > { %v2925_v43 = vrot.slane %v2924_v36, 4  ;;  %v2920_v52 = vmul.f32 %v4149_v39, %v4874_v47  ;;  %v2933_v44 = vadd.f32 %v2932_v30, %v2931_v31 }
 0xc52   : > { %v4151_v46 = vpop.eup %4150 }
 0xc53   : > { %v2926_v48 = vadd.f32 %v2925_v43, %v2924_v36  ;;  %v2938_v53 = vadd.f32 %v2921_v42, %v2920_v52  ;;  %v2934_v55 = vrot.slane %v2933_v44, 2  ;;  %v2923_v41 = vmul.f32 %v4151_v46, %v4886_v13 }
 0xc54   : > { %v4153_v33 = vpop.eup %4152 }
 0xc55   : > { %v2927_v49 = vrot.slane %v2926_v48, 2  ;;  %v2939_v54 = vrot.slane %v2938_v53, 4  ;;  %v2922_v50 = vmul.f32 %v4153_v33, %v4882_v10  ;;  %v2935_v62 = vadd.f32 %v2934_v55, %v2933_v44 }
 0xc57   : > { %v2928_v51 = vadd.f32 %v2927_v49, %v2926_v48  ;;  %v2940_v61 = vadd.f32 %v2939_v54, %v2938_v53  ;;  %v2945_v7 = vadd.f32 %v2923_v41, %v2922_v50  ;;  %v2936_v29 = vrot.slane %v2935_v62, 1 }
 0xc59   : > { %v2929_v24 = vrot.slane %v2928_v51, 1  ;;  %v2941_v56 = vrot.slane %v2940_v61, 2  ;;  %v2946_v47 = vrot.slane %v2945_v7, 4  ;;  %v2937_v1 = vadd.f32 %v2936_v29, %v2935_v62 }
 0xc5b   : > { %v2942_v40 = vadd.f32 %v2941_v56, %v2940_v61  ;;  %v2947_v26 = vadd.f32 %v2946_v47, %v2945_v7  ;;  %v2930_v18 = vadd.f32 %v2929_v24, %v2928_v51  ;;  %v2953_v27 = vmul.f32 0.0625, %v2937_v1 }
 0xc5d   : > { %v2948_v23 = vrot.slane %v2947_v26, 2  ;;  %v2943_v8 = vrot.slane %v2942_v40, 1  ;;  %v2952_v37 = vmul.f32 0.0625, %v2930_v18 }
 0xc5f   : > { %v2944_v25 = vadd.f32 %v2943_v8, %v2942_v40  ;;  %v2949_v13 = vadd.f32 %v2948_v23, %v2947_v26  ;;  %v2977_v22 = vsel %vm2976_vm2, %v2953_v27, %v2952_v37 }
 0xc61   : > { %v2950_v4 = vrot.slane %v2949_v13, 1  ;;  %v2954_v10 = vmul.f32 0.0625, %v2944_v25 }
 0xc63   : > { %v2951_v11 = vadd.f32 %v2950_v4, %v2949_v13  ;;  %v2979_v5 = vsel %vm2978_vm3, %v2954_v10, %v2977_v22 }
 0xc65   : > { %v2955_v9 = vmul.f32 0.0625, %v2951_v11 }
 0xc67   : > { %v2981_v6 = vsel %vm2980_vm4, %v2955_v9, %v2979_v5 }
 0xc68   : > { %3780 = vmatmul.mubr.f32.vlgmr.msra.gmra.mrb[0].mxu0 %v2981_v6 }
 0xd3b   : > { %v3049_v57 = vpop.f32.mrb[0].mxu0 }
 0xd3c   : > { %v3781_v2 = vpop.f32.mrb[1].mxu0  ;;  %v3063_v12 = vsel %vm3062_vm5, %v3049_v57, -inf }
 0xd3d   : > { %3064 = vmax.xlane.f32.xlu0 %v3063_v12 }
 0xd53   : > { %3057 = vperm.xlu0 %4137, %v3053_v3  }
 0xdca   : > { %v3065_v38 = vpop.xlane.xlu0 %3064 }
 0xdcb   : > { %v3066_v60 = vsub.f32 %v3049_v57, %v3065_v38  ;;  %vm3082_vm6 = vcmp.eq.f32.partialorder %v3049_v57, %v3065_v38 }
 0xdcc   : > { %v3083_v63 = vsel %vm3082_vm6, %v3055_v21, 10 }
 0xdcd   : > { %v3067_v14 = vmul.f32 1.442695, %v3066_v60  ;;  %v3084_v15 = vsel %vm3062_vm5, %v3083_v63, 2147483647 }
 0xdce   : > { %v3086_v35 = vshra.s32 %v3084_v15, 16  ;;  %v3085_v19 = vand.u32 65535, %v3084_v15 }
 0xdcf   : > { %4154 = vpow2.f32 %v3067_v14 }
 0xdd0   : > { %v3088_v45 = vcvt.s32.f32 %v3086_v35  ;;  %v3087_v32 = vcvt.s32.f32 %v3085_v19 }
 0xdd2   : > { %3089 = vmin.xlane.f32.xlu1 %v3088_v45  ;;  %v3058_v28 = vpop.permute.xlu0 %3057 }
 0xdd3   : > { %vm3059_vm7 = vcmp.eq.s32.totalorder %v3055_v21, %v3058_v28 }
 0xdd4   : > { %v3422_v59 = vsel %vm3059_vm7, 1.0, %v4202_v58 }
 0xdd5   : > { %v3075_v16 = vmul.f32 %v3422_v59, %v3049_v57 }
 0xdd7   : > { %v3076_v39 = vsel %vm3062_vm5, %v3075_v16, 0.0 }
 0xdd9   : > { %v4155_v17 = vpop.eup %4154 }
 0xdda   : > { %v3069_v0 = vsel %vm3062_vm5, %v4155_v17, 0.0 }
 0xddb   : > { %3070 = vadd.xlane.f32.xlu1 %v3069_v0 }
 0xe5f   : > { %v3090_v31 = vpop.xlane.xlu1 %3089 }
 0xe60   : > { %vm3091_vm8 = vcmp.eq.f32.partialorder %v3088_v45, %v3090_v31  ;;  %v3096_v43 = vcvt.f32.s32 %v3090_v31 }
 0xe61   : > { %v3092_v36 = vsel %vm3091_vm8, %v3087_v32, inf }
 0xe62   : > { %3093 = vmin.xlane.f32.xlu1 %v3092_v36  ;;  %v3097_v46 = vshll.u32 %v3096_v43, 16 }
 0xe66   : > { %3077 = vadd.xlane.f32.xlu1 %v3076_v39 }
 0xe68   : > { %v3071_v30 = vpop.xlane.xlu1 %3070 }
 0xe69   : > { %4156 = vlog2.f32 %v3071_v30 }
 0xe73   : > { %v4157_v42 = vpop.eup %4156 }
 0xe74   : > { %v3073_v52 = vmul.f32 0.6931472, %v4157_v42 }
 0xe76   : > { %v3074_v33 = vadd.f32 %v3073_v52, %v3065_v38 }
 0xeef   : > { %v3094_v44 = vpop.xlane.xlu1 %3093 }
 0xef0   : > { %v3095_v48 = vcvt.f32.s32 %v3094_v44 }
 0xef2   : > { %v3098_v53 = vadd.s32 %v3097_v46, %v3095_v48 }
 0xef3   : > { %v3078_v55 = vpop.xlane.xlu1 %3077 }
 0xef4   : > { %vm3099_vm10 = vcmp.eq.s32.totalorder %v3098_v53, %v3053_v3  ;;  %v3079_v41 = vsub.f32 %v3074_v33, %v3078_v55 }
 0xef5   : > { %v3423_v49 = vsel %vm3099_vm10, 1.0, %v4202_v58 }
 0xef6   : > { %3102 = vst.msk [vmem:[%s509_s8] sm:$0xf] %vm3080_vm9, %v3423_v49  ;;  %3081 = vst.msk [vmem:[%s505_s19] sm:$0xf] %vm3080_vm9, %v3079_v41 }
 0xef7 PF: > { %s5022_s29 = sld [smem:[#allocation5_spill]]  ;;  %s5023_s17 = sld [smem:[#allocation3_spill]] }
 0xef8   : > { %s5024_s18 = sld [smem:[#allocation4_spill]]  ;;  %s5025_s19 = sld [smem:[#allocation6_spill]] }
 0xef9   : > { %s5026_s20 = sld [smem:[#allocation7_spill]] }
 0xefd   : > { %s22_s21 = sadd.s32 1, %s5022_s29  }
 0xefe   : > { %p19_p10 = scmp.ge.s32.totalorder %s22_s21, 6  }
 0xf00   :  { %21 = sbr.rel (!%p19_p10) target bundleno = 3 (0x3), region = 125 }

</bundles_post_ra>
